<compile_context>
chip_gen: v7x
topology: tpu7x:2x2x1
jax: 0.10.0
libtpu: 0.0.40
codegen_flags: <defaults>
</compile_context>

<pallas_src>
import jax
import jax.numpy as jnp
from jax.experimental import pallas as pl
from jax.experimental.pallas import tpu as pltpu

VMEM = pl.BlockSpec(memory_space=pltpu.MemorySpace.VMEM)


# ---------------------------------------------------------------------------
# Single fused kernel: LSTM embeddings -> 2x (GENConv + ReLU + InstanceNorm)
#                      -> global max pool -> Linear -> sigmoid.
# ---------------------------------------------------------------------------
def _cov2gen_fused_kernel(
        xn_ref, xe_ref,                       # raw node / edge features
        nw_ref, nb_ref, ew_ref, eb_ref,       # LSTMCell i|g-gate weights (padded)
        s_src_ref, d_dst_ref, g_ref, gt_ref,  # graph structure one-hots (bf16)
        w1a_ref, b1a_ref, w2a_ref, b2a_ref,   # GENConv-1 MLP (BN folded, padded)
        w1b_ref, b1b_ref, w2b_ref, b2b_ref,   # GENConv-2 MLP
        lw_ref, lb_ref,                       # final Linear (padded input rows)
        out_ref):
    HP = w2a_ref.shape[1]                     # lane-dense padded hidden width

    # ---- LSTMCell with zero (h, c): c' = sigmoid(i) * tanh(g).
    #      Only the i and g gate columns were kept: weights are [F, 2*HP],
    #      with i in lanes [0:HP) and g in lanes [HP:2*HP).
    ng = jnp.dot(xn_ref[...], nw_ref[...],
                 preferred_element_type=jnp.float32) + nb_ref[...]          # [N, 2HP]
    x = jax.nn.sigmoid(ng[:, :HP]) * jnp.tanh(ng[:, HP:])                   # [N, HP]
    eg = jnp.dot(xe_ref[...], ew_ref[...],
                 preferred_element_type=jnp.float32) + eb_ref[...]          # [E, 2HP]
    ea = jax.nn.sigmoid(eg[:, :HP]) * jnp.tanh(eg[:, HP:])                  # [E, HP]

    # structural one-hots stored bf16 (exact 0/1); promote once in VMEM
    s_src = s_src_ref[...].astype(jnp.float32)            # [E, N]
    d_dst = d_dst_ref[...].astype(jnp.float32)            # [N, E]
    g = g_ref[...].astype(jnp.float32)                    # [B, N]
    gt = gt_ref[...].astype(jnp.float32)                  # [N, B]
    inv_cnt = 1.0 / jnp.sum(g, axis=1, keepdims=True)     # [B, 1] 1/nodes-per-graph

    def gen_conv_in(x, w1_ref, b1_ref, w2_ref, b2_ref):
        # ---- GENConv message: relu(x_src + edge_attr) + eps  (gather via matmul)
        x_src = jnp.dot(s_src, x, preferred_element_type=jnp.float32)       # [E, HP]
        msg = jnp.maximum(x_src + ea, 0.0) + 1e-7
        # ---- softmax aggregation per destination node (t = 1.0).
        # Shift by the per-channel global max: constant over all edges, so the
        # per-destination softmax weights are unchanged, and exp() <= 1 never
        # overflows.
        # TODO(synk): a true per-destination max would additionally avoid
        #             underflow when one node's messages sit >88 below the
        #             global channel max (pathological spread only).
        m = jnp.max(msg, axis=0, keepdims=True)                             # [1, HP]
        ex = jnp.exp(msg - m)
        denom = jnp.dot(d_dst, ex, preferred_element_type=jnp.float32)      # [N, HP]
        num = jnp.dot(d_dst, ex * msg, preferred_element_type=jnp.float32)  # [N, HP]
        has_in = denom > 0.0
        agg = jnp.where(has_in, num, 0.0) * pl.reciprocal(
            jnp.where(has_in, denom, 1.0), approx=True)
        # ---- residual + MLP: Linear(H,2H) -> BatchNorm(eval, folded) -> ReLU
        #      -> Linear(2H,H)
        h = agg + x
        h1 = jnp.maximum(
            jnp.dot(h, w1_ref[...], preferred_element_type=jnp.float32) + b1_ref[...],
            0.0)
        y = jnp.dot(h1, w2_ref[...], preferred_element_type=jnp.float32) + b2_ref[...]
        # ---- outer F.relu from Cov2GEN.forward
        y = jnp.maximum(y, 0.0)
        # ---- PyG InstanceNorm (per graph, per channel, biased var, affine=False)
        mean = jnp.dot(g, y, preferred_element_type=jnp.float32) * inv_cnt  # [B, HP]
        yc = y - jnp.dot(gt, mean, preferred_element_type=jnp.float32)      # [N, HP]
        var = jnp.dot(g, yc * yc, preferred_element_type=jnp.float32) * inv_cnt
        var_n = jnp.dot(gt, var, preferred_element_type=jnp.float32)        # [N, HP]
        return yc * jax.lax.rsqrt(var_n + 1e-5)

    h = gen_conv_in(x, w1a_ref, b1a_ref, w2a_ref, b2a_ref)
    h = gen_conv_in(h, w1b_ref, b1b_ref, w2b_ref, b2b_ref)

    # ---- global_max_pool + F.dropout(p=0.8, eval -> identity) + Linear + sigmoid
    B = gt.shape[1]
    neg = jnp.float32(-1e30)
    rows = []
    for b in range(B):                       # B is a tiny static constant
        mask_b = gt[:, b:b + 1] > 0.0
        rows.append(jnp.max(jnp.where(mask_b, h, neg), axis=0, keepdims=True))
    pooled = jnp.concatenate(rows, axis=0)   # [B, HP]
    out = jnp.dot(pooled, lw_ref[...], preferred_element_type=jnp.float32) + lb_ref[...]
    out_ref[...] = jax.nn.sigmoid(out)


# ---------------------------------------------------------------------------
# Parameter init (deterministic, PyTorch-style uniform bounds), pre-padded,
# BatchNorm(eval) folded, LSTM trimmed to the i/g gates.
# ---------------------------------------------------------------------------
def _uniform(key, shape, bound):
    return jax.random.uniform(key, shape, jnp.float32, -bound, bound)


def _pad2(a, rows, cols):
    out = jnp.zeros((rows, cols), jnp.float32)
    return out.at[:a.shape[0], :a.shape[1]].set(a)


def init_params(key, hidden_dim, output_dim, node_feat_dim, edge_feat_dim):
    H, O = hidden_dim, output_dim
    HP = ((H + 127) // 128) * 128            # lane-dense padded hidden width
    ks = jax.random.split(key, 16)
    bnd_h = 1.0 / jnp.sqrt(jnp.float32(H))
    bnd_2h = 1.0 / jnp.sqrt(jnp.float32(2 * H))
    bn_scale = 1.0 / jnp.sqrt(1.0 + 1e-5)    # eval BatchNorm: running 0/1, gamma=1, beta=0

    def lstm_ig(kw, kb1, kb2, fan_in):
        # PyTorch LSTMCell gate order i,f,g,o; with zero state only i,g matter.
        w = _uniform(kw, (fan_in, 4 * H), bnd_h)                       # weight_ih^T
        b = _uniform(kb1, (1, 4 * H), bnd_h) + _uniform(kb2, (1, 4 * H), bnd_h)
        wp = jnp.zeros((fan_in, 2 * HP), jnp.float32)
        wp = wp.at[:, 0:H].set(w[:, 0:H]).at[:, HP:HP + H].set(w[:, 2 * H:3 * H])
        bp = jnp.zeros((1, 2 * HP), jnp.float32)
        bp = bp.at[:, 0:H].set(b[:, 0:H]).at[:, HP:HP + H].set(b[:, 2 * H:3 * H])
        return wp, bp

    def gen_layer(k0, k1, k2, k3):
        w1 = _uniform(k0, (H, 2 * H), bnd_h) * bn_scale    # BN folded into Linear(H,2H)
        b1 = _uniform(k1, (1, 2 * H), bnd_h) * bn_scale
        w2 = _uniform(k2, (2 * H, H), bnd_2h)
        b2 = _uniform(k3, (1, H), bnd_2h)
        return {"w1": _pad2(w1, HP, 2 * HP), "b1": _pad2(b1, 1, 2 * HP),
                "w2": _pad2(w2, 2 * HP, HP), "b2": _pad2(b2, 1, HP)}

    node_w, node_b = lstm_ig(ks[0], ks[1], ks[2], node_feat_dim)
    edge_w, edge_b = lstm_ig(ks[3], ks[4], ks[5], edge_feat_dim)
    return {
        "node_w": node_w, "node_b": node_b,
        "edge_w": edge_w, "edge_b": edge_b,
        "genc1": gen_layer(ks[6], ks[7], ks[8], ks[9]),
        "genc2": gen_layer(ks[10], ks[11], ks[12], ks[13]),
        "lin_w": _pad2(_uniform(ks[14], (H, O), bnd_h), HP, O),   # Linear(H,O).weight^T
        "lin_b": _uniform(ks[15], (1, O), bnd_h),
    }


# ---------------------------------------------------------------------------
# Forward glue: build dense one-hot structure (bf16) and call the fused kernel.
# ---------------------------------------------------------------------------
def cov2gen_forward(params, x, edge_index, edge_attr, batch, num_graphs):
    src, dst = edge_index
    N = x.shape[0]
    O = params["lin_b"].shape[1]
    # TODO(synk): for large graphs replace the dense one-hots with int32 indices
    #             via PrefetchScalarGridSpec + in-kernel iota/compare gather.
    s_src = jax.nn.one_hot(src, N, dtype=jnp.bfloat16)            # [E, N]
    d_dst = jax.nn.one_hot(dst, N, dtype=jnp.bfloat16).T          # [N, E]
    gt = jax.nn.one_hot(batch, num_graphs, dtype=jnp.bfloat16)    # [N, B]
    g = gt.T                                                      # [B, N]

    return pl.pallas_call(
        _cov2gen_fused_kernel,
        out_shape=jax.ShapeDtypeStruct((num_graphs, O), jnp.float32),
        in_specs=[VMEM] * 20,
        out_specs=VMEM,
    )(x, edge_attr,
      params["node_w"], params["node_b"], params["edge_w"], params["edge_b"],
      s_src, d_dst, g, gt,
      params["genc1"]["w1"], params["genc1"]["b1"],
      params["genc1"]["w2"], params["genc1"]["b2"],
      params["genc2"]["w1"], params["genc2"]["b1"],
      params["genc2"]["w2"], params["genc2"]["b2"],
      params["lin_w"], params["lin_b"])


if __name__ == "__main__":
    key = jax.random.PRNGKey(0)
    N, E, B = 16, 32, 2          # nodes, edges, graphs
    FX, FE = 8, 6                # raw node / edge feature dims
    H, O = 32, 4                 # hidden_dim, output_dim

    kx, ke, k1, k2, k3, k4, kp = jax.random.split(key, 7)
    x = jax.random.normal(kx, (N, FX), jnp.float32)
    edge_attr = jax.random.normal(ke, (E, FE), jnp.float32)
    # edges confined to their own graph (first half graph 0, second half graph 1)
    src0 = jax.random.randint(k1, (E // 2,), 0, N // 2)
    dst0 = jax.random.randint(k2, (E // 2,), 0, N // 2)
    src1 = jax.random.randint(k3, (E // 2,), N // 2, N)
    dst1 = jax.random.randint(k4, (E // 2,), N // 2, N)
    src = jnp.concatenate([src0, src1]).astype(jnp.int32)
    dst = jnp.concatenate([dst0, dst1]).astype(jnp.int32)
    batch = jnp.concatenate([jnp.zeros(N // 2, jnp.int32),
                             jnp.ones(N // 2, jnp.int32)])

    params = init_params(kp, H, O, FX, FE)
    fwd = jax.jit(cov2gen_forward, static_argnums=(5,))
    out = fwd(params, x, (src, dst), edge_attr, batch, B)
    out = jax.block_until_ready(out)
    assert out.shape == (B, O) and bool(jnp.all(jnp.isfinite(out)))
    print("KERNEL_OK")
</pallas_src>

<mosaic_0001>
module attributes {stable_mosaic.version = 11 : i64} {
  func.func @_cov2gen_fused_kernel(%arg0: memref<16x8xf32, #tpu.memory_space<vmem>>, %arg1: memref<32x6xf32, #tpu.memory_space<vmem>>, %arg2: memref<8x256xf32, #tpu.memory_space<vmem>>, %arg3: memref<1x256xf32, #tpu.memory_space<vmem>>, %arg4: memref<6x256xf32, #tpu.memory_space<vmem>>, %arg5: memref<1x256xf32, #tpu.memory_space<vmem>>, %arg6: memref<32x16xbf16, #tpu.memory_space<vmem>>, %arg7: memref<16x32xbf16, #tpu.memory_space<vmem>>, %arg8: memref<2x16xbf16, #tpu.memory_space<vmem>>, %arg9: memref<16x2xbf16, #tpu.memory_space<vmem>>, %arg10: memref<128x256xf32, #tpu.memory_space<vmem>>, %arg11: memref<1x256xf32, #tpu.memory_space<vmem>>, %arg12: memref<256x128xf32, #tpu.memory_space<vmem>>, %arg13: memref<1x128xf32, #tpu.memory_space<vmem>>, %arg14: memref<128x256xf32, #tpu.memory_space<vmem>>, %arg15: memref<1x256xf32, #tpu.memory_space<vmem>>, %arg16: memref<256x128xf32, #tpu.memory_space<vmem>>, %arg17: memref<1x128xf32, #tpu.memory_space<vmem>>, %arg18: memref<128x4xf32, #tpu.memory_space<vmem>>, %arg19: memref<1x4xf32, #tpu.memory_space<vmem>>, %arg20: memref<2x4xf32, #tpu.memory_space<vmem>>) attributes {dimension_semantics = [], scalar_prefetch = 0 : i64, scratch_operands = 0 : i64, tpu.core_type = #tpu.core_type<tc>} {
    %c0 = arith.constant 0 : index
    %c0_0 = arith.constant 0 : index
    %0 = vector.load %arg0[%c0, %c0_0] : memref<16x8xf32, #tpu.memory_space<vmem>>, vector<16x8xf32>
    %c0_1 = arith.constant 0 : index
    %c0_2 = arith.constant 0 : index
    %1 = vector.load %arg2[%c0_1, %c0_2] : memref<8x256xf32, #tpu.memory_space<vmem>>, vector<8x256xf32>
    %cst = arith.constant dense<0.000000e+00> : vector<16x256xf32>
    %2 = tpu.matmul %0, %1, %cst {dimension_numbers = #tpu.dot_dimension_numbers<[1], [0], [0], [1], [0, 0, 1, 1], [], []>} : vector<16x8xf32>, vector<8x256xf32>, vector<16x256xf32> -> vector<16x256xf32>
    %c0_3 = arith.constant 0 : index
    %c0_4 = arith.constant 0 : index
    %3 = vector.load %arg3[%c0_3, %c0_4] : memref<1x256xf32, #tpu.memory_space<vmem>>, vector<1x256xf32>
    %4 = vector.broadcast %3 : vector<1x256xf32> to vector<16x256xf32>
    %5 = arith.addf %2, %4 : vector<16x256xf32>
    %6 = vector.extract_strided_slice %5 {offsets = [0, 0], sizes = [16, 128], strides = [1, 1]} : vector<16x256xf32> to vector<16x128xf32>
    %7 = arith.negf %6 : vector<16x128xf32>
    %8 = math.exp %7 : vector<16x128xf32>
    %cst_5 = arith.constant 1.000000e+00 : f32
    %9 = vector.broadcast %cst_5 : f32 to vector<16x128xf32>
    %10 = arith.addf %9, %8 : vector<16x128xf32>
    %11 = arith.divf %9, %10 : vector<16x128xf32>
    %12 = vector.extract_strided_slice %5 {offsets = [0, 128], sizes = [16, 128], strides = [1, 1]} : vector<16x256xf32> to vector<16x128xf32>
    %13 = math.tanh %12 : vector<16x128xf32>
    %14 = arith.mulf %11, %13 : vector<16x128xf32>
    %c0_6 = arith.constant 0 : index
    %c0_7 = arith.constant 0 : index
    %15 = vector.load %arg1[%c0_6, %c0_7] : memref<32x6xf32, #tpu.memory_space<vmem>>, vector<32x6xf32>
    %c0_8 = arith.constant 0 : index
    %c0_9 = arith.constant 0 : index
    %16 = vector.load %arg4[%c0_8, %c0_9] : memref<6x256xf32, #tpu.memory_space<vmem>>, vector<6x256xf32>
    %cst_10 = arith.constant dense<0.000000e+00> : vector<32x256xf32>
    %17 = tpu.matmul %15, %16, %cst_10 {dimension_numbers = #tpu.dot_dimension_numbers<[1], [0], [0], [1], [0, 0, 1, 1], [], []>} : vector<32x6xf32>, vector<6x256xf32>, vector<32x256xf32> -> vector<32x256xf32>
    %c0_11 = arith.constant 0 : index
    %c0_12 = arith.constant 0 : index
    %18 = vector.load %arg5[%c0_11, %c0_12] : memref<1x256xf32, #tpu.memory_space<vmem>>, vector<1x256xf32>
    %19 = vector.broadcast %18 : vector<1x256xf32> to vector<32x256xf32>
    %20 = arith.addf %17, %19 : vector<32x256xf32>
    %21 = vector.extract_strided_slice %20 {offsets = [0, 0], sizes = [32, 128], strides = [1, 1]} : vector<32x256xf32> to vector<32x128xf32>
    %22 = arith.negf %21 : vector<32x128xf32>
    %23 = math.exp %22 : vector<32x128xf32>
    %cst_13 = arith.constant 1.000000e+00 : f32
    %24 = vector.broadcast %cst_13 : f32 to vector<32x128xf32>
    %25 = arith.addf %24, %23 : vector<32x128xf32>
    %26 = arith.divf %24, %25 : vector<32x128xf32>
    %27 = vector.extract_strided_slice %20 {offsets = [0, 128], sizes = [32, 128], strides = [1, 1]} : vector<32x256xf32> to vector<32x128xf32>
    %28 = math.tanh %27 : vector<32x128xf32>
    %29 = arith.mulf %26, %28 : vector<32x128xf32>
    %c0_14 = arith.constant 0 : index
    %c0_15 = arith.constant 0 : index
    %30 = vector.load %arg6[%c0_14, %c0_15] : memref<32x16xbf16, #tpu.memory_space<vmem>>, vector<32x16xbf16>
    %31 = arith.extf %30 : vector<32x16xbf16> to vector<32x16xf32>
    %c0_16 = arith.constant 0 : index
    %c0_17 = arith.constant 0 : index
    %32 = vector.load %arg7[%c0_16, %c0_17] : memref<16x32xbf16, #tpu.memory_space<vmem>>, vector<16x32xbf16>
    %33 = arith.extf %32 : vector<16x32xbf16> to vector<16x32xf32>
    %c0_18 = arith.constant 0 : index
    %c0_19 = arith.constant 0 : index
    %34 = vector.load %arg8[%c0_18, %c0_19] : memref<2x16xbf16, #tpu.memory_space<vmem>>, vector<2x16xbf16>
    %35 = arith.extf %34 : vector<2x16xbf16> to vector<2x16xf32>
    %c0_20 = arith.constant 0 : index
    %c0_21 = arith.constant 0 : index
    %36 = vector.load %arg9[%c0_20, %c0_21] : memref<16x2xbf16, #tpu.memory_space<vmem>>, vector<16x2xbf16>
    %37 = arith.extf %36 : vector<16x2xbf16> to vector<16x2xf32>
    %cst_22 = arith.constant dense<0.000000e+00> : vector<2xf32>
    %38 = vector.multi_reduction <add>, %35, %cst_22 [1] : vector<2x16xf32> to vector<2xf32>
    %39 = vector.shape_cast %38 : vector<2xf32> to vector<2x1xf32>
    %cst_23 = arith.constant 1.000000e+00 : f32
    %40 = vector.broadcast %cst_23 : f32 to vector<2x1xf32>
    %41 = arith.divf %40, %39 : vector<2x1xf32>
    %cst_24 = arith.constant dense<0.000000e+00> : vector<32x128xf32>
    %42 = tpu.matmul %31, %14, %cst_24 {dimension_numbers = #tpu.dot_dimension_numbers<[1], [0], [0], [1], [0, 0, 1, 1], [], []>} : vector<32x16xf32>, vector<16x128xf32>, vector<32x128xf32> -> vector<32x128xf32>
    %43 = arith.addf %42, %29 : vector<32x128xf32>
    %cst_25 = arith.constant 0.000000e+00 : f32
    %44 = vector.broadcast %cst_25 : f32 to vector<32x128xf32>
    %45 = arith.maximumf %43, %44 : vector<32x128xf32>
    %cst_26 = arith.constant 1.000000e-07 : f32
    %46 = vector.broadcast %cst_26 : f32 to vector<32x128xf32>
    %47 = arith.addf %45, %46 : vector<32x128xf32>
    %cst_27 = arith.constant dense<0xFF800000> : vector<128xf32>
    %48 = vector.multi_reduction <maximumf>, %47, %cst_27 [0] : vector<32x128xf32> to vector<128xf32>
    %49 = vector.shape_cast %48 : vector<128xf32> to vector<1x128xf32>
    %50 = vector.broadcast %49 : vector<1x128xf32> to vector<32x128xf32>
    %51 = arith.subf %47, %50 : vector<32x128xf32>
    %52 = math.exp %51 : vector<32x128xf32>
    %cst_28 = arith.constant dense<0.000000e+00> : vector<16x128xf32>
    %53 = tpu.matmul %33, %52, %cst_28 {dimension_numbers = #tpu.dot_dimension_numbers<[1], [0], [0], [1], [0, 0, 1, 1], [], []>} : vector<16x32xf32>, vector<32x128xf32>, vector<16x128xf32> -> vector<16x128xf32>
    %54 = arith.mulf %52, %47 : vector<32x128xf32>
    %cst_29 = arith.constant dense<0.000000e+00> : vector<16x128xf32>
    %55 = tpu.matmul %33, %54, %cst_29 {dimension_numbers = #tpu.dot_dimension_numbers<[1], [0], [0], [1], [0, 0, 1, 1], [], []>} : vector<16x32xf32>, vector<32x128xf32>, vector<16x128xf32> -> vector<16x128xf32>
    %cst_30 = arith.constant 0.000000e+00 : f32
    %56 = vector.broadcast %cst_30 : f32 to vector<16x128xf32>
    %57 = arith.cmpf ogt, %53, %56 : vector<16x128xf32>
    %cst_31 = arith.constant 0.000000e+00 : f32
    %58 = vector.broadcast %cst_31 : f32 to vector<16x128xf32>
    %59 = arith.select %57, %55, %58 : vector<16x128xi1>, vector<16x128xf32>
    %cst_32 = arith.constant 1.000000e+00 : f32
    %60 = vector.broadcast %cst_32 : f32 to vector<16x128xf32>
    %61 = arith.select %57, %53, %60 : vector<16x128xi1>, vector<16x128xf32>
    %62 = tpu.reciprocal %61 {approx = true} : vector<16x128xf32> -> vector<16x128xf32>
    %63 = arith.mulf %59, %62 : vector<16x128xf32>
    %64 = arith.addf %63, %14 : vector<16x128xf32>
    %c0_33 = arith.constant 0 : index
    %c0_34 = arith.constant 0 : index
    %65 = vector.load %arg10[%c0_33, %c0_34] : memref<128x256xf32, #tpu.memory_space<vmem>>, vector<128x256xf32>
    %cst_35 = arith.constant dense<0.000000e+00> : vector<16x256xf32>
    %66 = tpu.matmul %64, %65, %cst_35 {dimension_numbers = #tpu.dot_dimension_numbers<[1], [0], [0], [1], [0, 0, 1, 1], [], []>} : vector<16x128xf32>, vector<128x256xf32>, vector<16x256xf32> -> vector<16x256xf32>
    %c0_36 = arith.constant 0 : index
    %c0_37 = arith.constant 0 : index
    %67 = vector.load %arg11[%c0_36, %c0_37] : memref<1x256xf32, #tpu.memory_space<vmem>>, vector<1x256xf32>
    %68 = vector.broadcast %67 : vector<1x256xf32> to vector<16x256xf32>
    %69 = arith.addf %66, %68 : vector<16x256xf32>
    %cst_38 = arith.constant 0.000000e+00 : f32
    %70 = vector.broadcast %cst_38 : f32 to vector<16x256xf32>
    %71 = arith.maximumf %69, %70 : vector<16x256xf32>
    %c0_39 = arith.constant 0 : index
    %c0_40 = arith.constant 0 : index
    %72 = vector.load %arg12[%c0_39, %c0_40] : memref<256x128xf32, #tpu.memory_space<vmem>>, vector<256x128xf32>
    %cst_41 = arith.constant dense<0.000000e+00> : vector<16x128xf32>
    %73 = tpu.matmul %71, %72, %cst_41 {dimension_numbers = #tpu.dot_dimension_numbers<[1], [0], [0], [1], [0, 0, 1, 1], [], []>} : vector<16x256xf32>, vector<256x128xf32>, vector<16x128xf32> -> vector<16x128xf32>
    %c0_42 = arith.constant 0 : index
    %c0_43 = arith.constant 0 : index
    %74 = vector.load %arg13[%c0_42, %c0_43] : memref<1x128xf32, #tpu.memory_space<vmem>>, vector<1x128xf32>
    %75 = vector.broadcast %74 : vector<1x128xf32> to vector<16x128xf32>
    %76 = arith.addf %73, %75 : vector<16x128xf32>
    %cst_44 = arith.constant 0.000000e+00 : f32
    %77 = vector.broadcast %cst_44 : f32 to vector<16x128xf32>
    %78 = arith.maximumf %76, %77 : vector<16x128xf32>
    %cst_45 = arith.constant dense<0.000000e+00> : vector<2x128xf32>
    %79 = tpu.matmul %35, %78, %cst_45 {dimension_numbers = #tpu.dot_dimension_numbers<[1], [0], [0], [1], [0, 0, 1, 1], [], []>} : vector<2x16xf32>, vector<16x128xf32>, vector<2x128xf32> -> vector<2x128xf32>
    %80 = vector.broadcast %41 : vector<2x1xf32> to vector<2x128xf32>
    %81 = arith.mulf %79, %80 : vector<2x128xf32>
    %cst_46 = arith.constant dense<0.000000e+00> : vector<16x128xf32>
    %82 = tpu.matmul %37, %81, %cst_46 {dimension_numbers = #tpu.dot_dimension_numbers<[1], [0], [0], [1], [0, 0, 1, 1], [], []>} : vector<16x2xf32>, vector<2x128xf32>, vector<16x128xf32> -> vector<16x128xf32>
    %83 = arith.subf %78, %82 : vector<16x128xf32>
    %84 = arith.mulf %83, %83 : vector<16x128xf32>
    %cst_47 = arith.constant dense<0.000000e+00> : vector<2x128xf32>
    %85 = tpu.matmul %35, %84, %cst_47 {dimension_numbers = #tpu.dot_dimension_numbers<[1], [0], [0], [1], [0, 0, 1, 1], [], []>} : vector<2x16xf32>, vector<16x128xf32>, vector<2x128xf32> -> vector<2x128xf32>
    %86 = vector.broadcast %41 : vector<2x1xf32> to vector<2x128xf32>
    %87 = arith.mulf %85, %86 : vector<2x128xf32>
    %cst_48 = arith.constant dense<0.000000e+00> : vector<16x128xf32>
    %88 = tpu.matmul %37, %87, %cst_48 {dimension_numbers = #tpu.dot_dimension_numbers<[1], [0], [0], [1], [0, 0, 1, 1], [], []>} : vector<16x2xf32>, vector<2x128xf32>, vector<16x128xf32> -> vector<16x128xf32>
    %cst_49 = arith.constant 9.99999974E-6 : f32
    %89 = vector.broadcast %cst_49 : f32 to vector<16x128xf32>
    %90 = arith.addf %88, %89 : vector<16x128xf32>
    %91 = math.rsqrt %90 : vector<16x128xf32>
    %92 = arith.mulf %83, %91 : vector<16x128xf32>
    %cst_50 = arith.constant dense<0.000000e+00> : vector<32x128xf32>
    %93 = tpu.matmul %31, %92, %cst_50 {dimension_numbers = #tpu.dot_dimension_numbers<[1], [0], [0], [1], [0, 0, 1, 1], [], []>} : vector<32x16xf32>, vector<16x128xf32>, vector<32x128xf32> -> vector<32x128xf32>
    %94 = arith.addf %93, %29 : vector<32x128xf32>
    %cst_51 = arith.constant 0.000000e+00 : f32
    %95 = vector.broadcast %cst_51 : f32 to vector<32x128xf32>
    %96 = arith.maximumf %94, %95 : vector<32x128xf32>
    %cst_52 = arith.constant 1.000000e-07 : f32
    %97 = vector.broadcast %cst_52 : f32 to vector<32x128xf32>
    %98 = arith.addf %96, %97 : vector<32x128xf32>
    %cst_53 = arith.constant dense<0xFF800000> : vector<128xf32>
    %99 = vector.multi_reduction <maximumf>, %98, %cst_53 [0] : vector<32x128xf32> to vector<128xf32>
    %100 = vector.shape_cast %99 : vector<128xf32> to vector<1x128xf32>
    %101 = vector.broadcast %100 : vector<1x128xf32> to vector<32x128xf32>
    %102 = arith.subf %98, %101 : vector<32x128xf32>
    %103 = math.exp %102 : vector<32x128xf32>
    %cst_54 = arith.constant dense<0.000000e+00> : vector<16x128xf32>
    %104 = tpu.matmul %33, %103, %cst_54 {dimension_numbers = #tpu.dot_dimension_numbers<[1], [0], [0], [1], [0, 0, 1, 1], [], []>} : vector<16x32xf32>, vector<32x128xf32>, vector<16x128xf32> -> vector<16x128xf32>
    %105 = arith.mulf %103, %98 : vector<32x128xf32>
    %cst_55 = arith.constant dense<0.000000e+00> : vector<16x128xf32>
    %106 = tpu.matmul %33, %105, %cst_55 {dimension_numbers = #tpu.dot_dimension_numbers<[1], [0], [0], [1], [0, 0, 1, 1], [], []>} : vector<16x32xf32>, vector<32x128xf32>, vector<16x128xf32> -> vector<16x128xf32>
    %cst_56 = arith.constant 0.000000e+00 : f32
    %107 = vector.broadcast %cst_56 : f32 to vector<16x128xf32>
    %108 = arith.cmpf ogt, %104, %107 : vector<16x128xf32>
    %cst_57 = arith.constant 0.000000e+00 : f32
    %109 = vector.broadcast %cst_57 : f32 to vector<16x128xf32>
    %110 = arith.select %108, %106, %109 : vector<16x128xi1>, vector<16x128xf32>
    %cst_58 = arith.constant 1.000000e+00 : f32
    %111 = vector.broadcast %cst_58 : f32 to vector<16x128xf32>
    %112 = arith.select %108, %104, %111 : vector<16x128xi1>, vector<16x128xf32>
    %113 = tpu.reciprocal %112 {approx = true} : vector<16x128xf32> -> vector<16x128xf32>
    %114 = arith.mulf %110, %113 : vector<16x128xf32>
    %115 = arith.addf %114, %92 : vector<16x128xf32>
    %c0_59 = arith.constant 0 : index
    %c0_60 = arith.constant 0 : index
    %116 = vector.load %arg14[%c0_59, %c0_60] : memref<128x256xf32, #tpu.memory_space<vmem>>, vector<128x256xf32>
    %cst_61 = arith.constant dense<0.000000e+00> : vector<16x256xf32>
    %117 = tpu.matmul %115, %116, %cst_61 {dimension_numbers = #tpu.dot_dimension_numbers<[1], [0], [0], [1], [0, 0, 1, 1], [], []>} : vector<16x128xf32>, vector<128x256xf32>, vector<16x256xf32> -> vector<16x256xf32>
    %c0_62 = arith.constant 0 : index
    %c0_63 = arith.constant 0 : index
    %118 = vector.load %arg15[%c0_62, %c0_63] : memref<1x256xf32, #tpu.memory_space<vmem>>, vector<1x256xf32>
    %119 = vector.broadcast %118 : vector<1x256xf32> to vector<16x256xf32>
    %120 = arith.addf %117, %119 : vector<16x256xf32>
    %cst_64 = arith.constant 0.000000e+00 : f32
    %121 = vector.broadcast %cst_64 : f32 to vector<16x256xf32>
    %122 = arith.maximumf %120, %121 : vector<16x256xf32>
    %c0_65 = arith.constant 0 : index
    %c0_66 = arith.constant 0 : index
    %123 = vector.load %arg16[%c0_65, %c0_66] : memref<256x128xf32, #tpu.memory_space<vmem>>, vector<256x128xf32>
    %cst_67 = arith.constant dense<0.000000e+00> : vector<16x128xf32>
    %124 = tpu.matmul %122, %123, %cst_67 {dimension_numbers = #tpu.dot_dimension_numbers<[1], [0], [0], [1], [0, 0, 1, 1], [], []>} : vector<16x256xf32>, vector<256x128xf32>, vector<16x128xf32> -> vector<16x128xf32>
    %c0_68 = arith.constant 0 : index
    %c0_69 = arith.constant 0 : index
    %125 = vector.load %arg17[%c0_68, %c0_69] : memref<1x128xf32, #tpu.memory_space<vmem>>, vector<1x128xf32>
    %126 = vector.broadcast %125 : vector<1x128xf32> to vector<16x128xf32>
    %127 = arith.addf %124, %126 : vector<16x128xf32>
    %cst_70 = arith.constant 0.000000e+00 : f32
    %128 = vector.broadcast %cst_70 : f32 to vector<16x128xf32>
    %129 = arith.maximumf %127, %128 : vector<16x128xf32>
    %cst_71 = arith.constant dense<0.000000e+00> : vector<2x128xf32>
    %130 = tpu.matmul %35, %129, %cst_71 {dimension_numbers = #tpu.dot_dimension_numbers<[1], [0], [0], [1], [0, 0, 1, 1], [], []>} : vector<2x16xf32>, vector<16x128xf32>, vector<2x128xf32> -> vector<2x128xf32>
    %131 = vector.broadcast %41 : vector<2x1xf32> to vector<2x128xf32>
    %132 = arith.mulf %130, %131 : vector<2x128xf32>
    %cst_72 = arith.constant dense<0.000000e+00> : vector<16x128xf32>
    %133 = tpu.matmul %37, %132, %cst_72 {dimension_numbers = #tpu.dot_dimension_numbers<[1], [0], [0], [1], [0, 0, 1, 1], [], []>} : vector<16x2xf32>, vector<2x128xf32>, vector<16x128xf32> -> vector<16x128xf32>
    %134 = arith.subf %129, %133 : vector<16x128xf32>
    %135 = arith.mulf %134, %134 : vector<16x128xf32>
    %cst_73 = arith.constant dense<0.000000e+00> : vector<2x128xf32>
    %136 = tpu.matmul %35, %135, %cst_73 {dimension_numbers = #tpu.dot_dimension_numbers<[1], [0], [0], [1], [0, 0, 1, 1], [], []>} : vector<2x16xf32>, vector<16x128xf32>, vector<2x128xf32> -> vector<2x128xf32>
    %137 = vector.broadcast %41 : vector<2x1xf32> to vector<2x128xf32>
    %138 = arith.mulf %136, %137 : vector<2x128xf32>
    %cst_74 = arith.constant dense<0.000000e+00> : vector<16x128xf32>
    %139 = tpu.matmul %37, %138, %cst_74 {dimension_numbers = #tpu.dot_dimension_numbers<[1], [0], [0], [1], [0, 0, 1, 1], [], []>} : vector<16x2xf32>, vector<2x128xf32>, vector<16x128xf32> -> vector<16x128xf32>
    %cst_75 = arith.constant 9.99999974E-6 : f32
    %140 = vector.broadcast %cst_75 : f32 to vector<16x128xf32>
    %141 = arith.addf %139, %140 : vector<16x128xf32>
    %142 = math.rsqrt %141 : vector<16x128xf32>
    %143 = arith.mulf %134, %142 : vector<16x128xf32>
    %144 = vector.extract_strided_slice %37 {offsets = [0, 0], sizes = [16, 1], strides = [1, 1]} : vector<16x2xf32> to vector<16x1xf32>
    %cst_76 = arith.constant 0.000000e+00 : f32
    %145 = vector.broadcast %cst_76 : f32 to vector<16x1xf32>
    %146 = arith.cmpf ogt, %144, %145 : vector<16x1xf32>
    %cst_77 = arith.constant -1.000000e+30 : f32
    %147 = vector.shape_cast %146 : vector<16x1xi1> to vector<16x1xi1>
    %148 = vector.broadcast %147 : vector<16x1xi1> to vector<16x128xi1>
    %149 = vector.broadcast %cst_77 : f32 to vector<16x128xf32>
    %150 = arith.select %148, %143, %149 : vector<16x128xi1>, vector<16x128xf32>
    %cst_78 = arith.constant dense<0xFF800000> : vector<128xf32>
    %151 = vector.multi_reduction <maximumf>, %150, %cst_78 [0] : vector<16x128xf32> to vector<128xf32>
    %152 = vector.shape_cast %151 : vector<128xf32> to vector<1x128xf32>
    %153 = vector.extract_strided_slice %37 {offsets = [0, 1], sizes = [16, 1], strides = [1, 1]} : vector<16x2xf32> to vector<16x1xf32>
    %cst_79 = arith.constant 0.000000e+00 : f32
    %154 = vector.broadcast %cst_79 : f32 to vector<16x1xf32>
    %155 = arith.cmpf ogt, %153, %154 : vector<16x1xf32>
    %cst_80 = arith.constant -1.000000e+30 : f32
    %156 = vector.shape_cast %155 : vector<16x1xi1> to vector<16x1xi1>
    %157 = vector.broadcast %156 : vector<16x1xi1> to vector<16x128xi1>
    %158 = vector.broadcast %cst_80 : f32 to vector<16x128xf32>
    %159 = arith.select %157, %143, %158 : vector<16x128xi1>, vector<16x128xf32>
    %cst_81 = arith.constant dense<0xFF800000> : vector<128xf32>
    %160 = vector.multi_reduction <maximumf>, %159, %cst_81 [0] : vector<16x128xf32> to vector<128xf32>
    %161 = vector.shape_cast %160 : vector<128xf32> to vector<1x128xf32>
    %162 = tpu.concatenate %152, %161 in 0 : vector<1x128xf32>, vector<1x128xf32> -> vector<2x128xf32>
    %c0_82 = arith.constant 0 : index
    %c0_83 = arith.constant 0 : index
    %163 = vector.load %arg18[%c0_82, %c0_83] : memref<128x4xf32, #tpu.memory_space<vmem>>, vector<128x4xf32>
    %cst_84 = arith.constant dense<0.000000e+00> : vector<2x4xf32>
    %164 = tpu.matmul %162, %163, %cst_84 {dimension_numbers = #tpu.dot_dimension_numbers<[1], [0], [0], [1], [0, 0, 1, 1], [], []>} : vector<2x128xf32>, vector<128x4xf32>, vector<2x4xf32> -> vector<2x4xf32>
    %c0_85 = arith.constant 0 : index
    %c0_86 = arith.constant 0 : index
    %165 = vector.load %arg19[%c0_85, %c0_86] : memref<1x4xf32, #tpu.memory_space<vmem>>, vector<1x4xf32>
    %166 = vector.broadcast %165 : vector<1x4xf32> to vector<2x4xf32>
    %167 = arith.addf %164, %166 : vector<2x4xf32>
    %168 = arith.negf %167 : vector<2x4xf32>
    %169 = math.exp %168 : vector<2x4xf32>
    %cst_87 = arith.constant 1.000000e+00 : f32
    %170 = vector.broadcast %cst_87 : f32 to vector<2x4xf32>
    %171 = arith.addf %170, %169 : vector<2x4xf32>
    %172 = arith.divf %170, %171 : vector<2x4xf32>
    %c0_88 = arith.constant 0 : index
    %c0_89 = arith.constant 0 : index
    %173 = vector.load %arg20[%c0_88, %c0_89] : memref<2x4xf32, #tpu.memory_space<vmem>>, vector<2x4xf32>
    tpu.vector_store %arg20[%c0_88, %c0_89], %172 {strides = array<i32>} : memref<2x4xf32, #tpu.memory_space<vmem>>, vector<2x4xf32>,
    return
  }
}

</mosaic_0001>

<bundles_post_ra>
// kernel: cov2gen_forward.1
= control target key start
LH: loop header
LB: loop body
LE: loop exit
PB: predicated region body
PF: predicated region fallthrough
CT: control target
= control target key end

     0   :  { %s3947_s0 = inlined_call_operand.vmem [shape: f32[16,8], index: 0, kind: input, shape index: {}]   ;;  %s3948_s1 = inlined_call_operand.vmem [shape: f32[32,6], index: 1, kind: input, shape index: {}]   ;;  %s3949_s2 = inlined_call_operand.vmem [shape: f32[8,256], index: 2, kind: input, shape index: {}]   ;;  %s3950_s3 = inlined_call_operand.hbm [shape: f32[1,256], index: 3, kind: input, shape index: {}]   ;;  %s3951_s4 = inlined_call_operand.hbm [shape: f32[6,256], index: 4, kind: input, shape index: {}]   ;;  %s3952_s5 = inlined_call_operand.hbm [shape: f32[1,256], index: 5, kind: input, shape index: {}]   ;;  %s3953_s6 = inlined_call_operand.vmem [shape: bf16[32,16], index: 6, kind: input, shape index: {}]   ;;  %s3954_s7 = inlined_call_operand.vmem [shape: bf16[16,32], index: 7, kind: input, shape index: {}]   ;;  %s3955_s8 = inlined_call_operand.vmem [shape: bf16[2,16], index: 8, kind: input, shape index: {}]   ;;  %s3956_s9 = inlined_call_operand.vmem [shape: bf16[16,2], index: 9, kind: input, shape index: {}]   ;;  %s3957_s10 = inlined_call_operand.hbm [shape: f32[128,256], index: 10, kind: input, shape index: {}]   ;;  %s3958_s11 = inlined_call_operand.hbm [shape: f32[1,256], index: 11, kind: input, shape index: {}]   ;;  %s3959_s12 = inlined_call_operand.hbm [shape: f32[256,128], index: 12, kind: input, shape index: {}]   ;;  %s3960_s13 = inlined_call_operand.hbm [shape: f32[1,128], index: 13, kind: input, shape index: {}]   ;;  %s3961_s14 = inlined_call_operand.vmem [shape: f32[128,256], index: 14, kind: input, shape index: {}]   ;;  %s3962_s15 = inlined_call_operand.hbm [shape: f32[1,256], index: 15, kind: input, shape index: {}]   ;;  %s3963_s16 = inlined_call_operand.hbm [shape: f32[256,128], index: 16, kind: input, shape index: {}]   ;;  %s3964_s17 = inlined_call_operand.hbm [shape: f32[1,128], index: 17, kind: input, shape index: {}]   ;;  %s3965_s18 = inlined_call_operand.vmem [shape: f32[128,4], index: 18, kind: input, shape index: {}]   ;;  %s3966_s19 = inlined_call_operand.hbm [shape: f32[1,4], index: 19, kind: input, shape index: {}]   ;;  %s3967_s20 = inlined_call_operand.hbm [shape: f32[2,4], index: 20, kind: output, shape index: {}]  }
   0x1   :  { %3973 = sst [smem:[#allocation28_spill]] %s3947_s0 }
   0x2   :  { %3974 = sst [smem:[#allocation29_spill]] %s3948_s1 }
   0x3   :  { %3975 = sst [smem:[#allocation30_spill]] %s3949_s2 }
   0x4   :  { %3976 = sst [smem:[#allocation31_spill]] %s3950_s3 }
   0x5   :  { %3977 = sst [smem:[#allocation32_spill]] %s3951_s4 }
   0x6   :  { %25 = vsyncpa [#allocation3], 0 }
   0x7   :  { %26 = vsyncpa [#allocation6], 0 }
   0x8   :  { %27 = vsyncpa [#allocation9], 0 }
   0x9   :  { %28 = vsyncpa [#allocation12], 0 }
   0xa   :  { %29 = vsyncpa [#allocation15], 0 }
   0xb   :  { %30 = vsyncpa [#allocation18], 0 }
   0xc   :  { %31 = vsyncpa [#allocation4], 0  ;;  %s3292_s1 = smov [#allocation5]   ;;  %s3293_s23 = smov [#allocation8]  }
   0xd   :  { %s54_s22 = sshll.u32 %s3292_s1, 4  ;;  %s81_s24 = sshll.u32 %s3293_s23, 4  ;;  %s55_s22 = int_to_ptr.vmem [resolvable:$true] %s54_s22  ;;  %s3418_s24 = int_to_ptr.vmem [resolvable:$true] %s81_s24 }
   0xe   :  { %s3978_s3 = sld [smem:[#allocation32_spill]] }
  0x14   :  { %s3014_s26 = scalar_lea.hbm %s3978_s3, 256 }
  0x15   :  { %p3015_p0 = scmp.ne.s32.totalorder %s3978_s3, %s3014_s26  ;;  %p3018_p1 = scmp.lt.u32.totalorder %s3014_s26, %s3978_s3 }
  0x17   :  { %p3020_p2 = pnand %p3018_p1, %p3015_p0 }
  0x19   :  { %3023 = shalt.err (!%p3020_p2)
}
  0x1a   :  { %s3024_s30 = scalar_lea.vmem %s55_s22, 256  ;;  %p3029_p4 = scmp.lt.s32.totalorder %s55_s22, %s55_s22 }
  0x1b   :  { %p3025_p3 = scmp.ne.s32.totalorder %s55_s22, %s3024_s30  ;;  %p3030_p5 = scmp.lt.s32.totalorder %s3024_s30, %s3024_s30 }
  0x1d   :  { %p3031_p6 = por %p3030_p5, %p3029_p4 }
  0x1f   :  { %p3032_p7 = pnand %p3031_p6, %p3025_p3 }
  0x21   :  { %3035 = shalt.err (!%p3032_p7)
}
  0x22   :  { %57 = dma.hbm_to_vmem [thread:$0]  %s3978_s3, 256, %s55_s22, [#allocation6]  }
  0x23   :  { %s3036_s2 = scalar_lea.hbm %s3957_s10, 4096 }
  0x24   :  { %p3037_p8 = scmp.ne.s32.totalorder %s3957_s10, %s3036_s2  ;;  %p3040_p9 = scmp.lt.u32.totalorder %s3036_s2, %s3957_s10 }
  0x26   :  { %p3042_p10 = pnand %p3040_p9, %p3037_p8 }
  0x28   :  { %3045 = shalt.err (!%p3042_p10)
}
  0x29   :  { %s3046_s4 = scalar_lea.vmem %s3418_s24, 4096  ;;  %p3051_p12 = scmp.lt.s32.totalorder %s3418_s24, %s3418_s24 }
  0x2a   :  { %p3047_p11 = scmp.ne.s32.totalorder %s3418_s24, %s3046_s4  ;;  %p3052_p13 = scmp.lt.s32.totalorder %s3046_s4, %s3046_s4 }
  0x2c   :  { %p3053_p0 = por %p3052_p13, %p3051_p12 }
  0x2e   :  { %p3054_p1 = pnand %p3053_p0, %p3047_p11 }
  0x30   :  { %3057 = shalt.err (!%p3054_p1)
}
  0x31   :  { %s3294_s22 = smov 256   ;;  %s3295_s3 = smov 16  }
  0x32   :  { %87 = dma.hbm_to_vmem [thread:$0]  %s3957_s10, 4096, %s3418_s24, [#allocation9], %s3294_s22, %s3294_s22, %s3295_s3  }
  0x33   :  { %s3296_s0 = smov [#allocation11]   ;;  %s3058_s2 = scalar_lea.hbm %s3959_s12, 4096 }
  0x34   :  { %s103_s21 = sshll.u32 %s3296_s0, 4  ;;  %p3059_p2 = scmp.ne.s32.totalorder %s3959_s12, %s3058_s2  ;;  %s104_s21 = int_to_ptr.vmem [resolvable:$true] %s103_s21 }
  0x35   :  { %p3062_p3 = scmp.lt.u32.totalorder %s3058_s2, %s3959_s12 }
  0x37   :  { %p3064_p4 = pnand %p3062_p3, %p3059_p2 }
  0x39   :  { %3067 = shalt.err (!%p3064_p4)
}
  0x3a   :  { %s3068_s4 = scalar_lea.vmem %s104_s21, 4096  ;;  %p3073_p6 = scmp.lt.s32.totalorder %s104_s21, %s104_s21 }
  0x3b   :  { %p3069_p5 = scmp.ne.s32.totalorder %s104_s21, %s3068_s4  ;;  %p3074_p7 = scmp.lt.s32.totalorder %s3068_s4, %s3068_s4 }
  0x3d   :  { %p3075_p8 = por %p3074_p7, %p3073_p6 }
  0x3f   :  { %p3076_p9 = pnand %p3075_p8, %p3069_p5 }
  0x41   :  { %3079 = shalt.err (!%p3076_p9)
}
  0x42   :  { %s3297_s10 = smov 128   ;;  %s3298_s24 = smov 8  }
  0x43   :  { %109 = dma.hbm_to_vmem [thread:$0]  %s3959_s12, 4096, %s104_s21, [#allocation12], %s3297_s10, %s3297_s10, %s3298_s24  }
  0x44   :  { %s3299_s29 = smov [#allocation14]   ;;  %s3300_s0 = smov [#allocation17]  }
  0x45   :  { %s128_s30 = sshll.u32 %s3299_s29, 4  ;;  %s150_s1 = sshll.u32 %s3300_s0, 4  ;;  %s129_s30 = int_to_ptr.vmem [resolvable:$true] %s128_s30  ;;  %s151_s1 = int_to_ptr.vmem [resolvable:$true] %s150_s1 }
  0x46   :  { %s3080_s25 = scalar_lea.hbm %s3962_s15, 32 }
  0x47   :  { %p3081_p10 = scmp.ne.s32.totalorder %s3962_s15, %s3080_s25  ;;  %p3084_p11 = scmp.lt.u32.totalorder %s3080_s25, %s3962_s15 }
  0x49   :  { %p3086_p12 = pnand %p3084_p11, %p3081_p10 }
  0x4b   :  { %3089 = shalt.err (!%p3086_p12)
}
  0x4c   :  { %s3090_s12 = scalar_lea.vmem %s129_s30, 32  ;;  %p3095_p0 = scmp.lt.s32.totalorder %s129_s30, %s129_s30 }
  0x4d   :  { %p3091_p13 = scmp.ne.s32.totalorder %s129_s30, %s3090_s12  ;;  %p3096_p1 = scmp.lt.s32.totalorder %s3090_s12, %s3090_s12 }
  0x4f   :  { %p3097_p2 = por %p3096_p1, %p3095_p0 }
  0x51   :  { %p3098_p3 = pnand %p3097_p2, %p3091_p13 }
  0x53   :  { %3101 = shalt.err (!%p3098_p3)
}
  0x54   :  { %131 = dma.hbm_to_vmem [thread:$0]  %s3962_s15, 32, %s129_s30, [#allocation15]  }
  0x55   :  { %s3102_s0 = scalar_lea.hbm %s3964_s17, 16 }
  0x56   :  { %p3103_p4 = scmp.ne.s32.totalorder %s3964_s17, %s3102_s0  ;;  %p3106_p5 = scmp.lt.u32.totalorder %s3102_s0, %s3964_s17 }
  0x58   :  { %p3108_p6 = pnand %p3106_p5, %p3103_p4 }
  0x5a   :  { %3111 = shalt.err (!%p3108_p6)
}
  0x5b   :  { %s3112_s26 = scalar_lea.vmem %s151_s1, 16  ;;  %s3116_s28 = scalar_lea.vmem %s151_s1, 32 }
  0x5c   :  { %p3113_p7 = scmp.ne.s32.totalorder %s151_s1, %s3112_s26  ;;  %p3117_p8 = scmp.lt.s32.totalorder %s151_s1, %s151_s1 }
  0x5d   :  { %p3118_p9 = scmp.lt.s32.totalorder %s3116_s28, %s3112_s26 }
  0x5f   :  { %p3119_p10 = por %p3118_p9, %p3117_p8 }
  0x61   :  { %p3120_p11 = pnand %p3119_p10, %p3113_p7 }
  0x63   :  { %3123 = shalt.err (!%p3120_p11)
}
  0x64   :  { %153 = dma.hbm_to_vmem [thread:$0]  %s3964_s17, 16, %s151_s1, [#allocation18]  }
  0x65   :  { %s3301_s4 = smov [#allocation2]   ;;  %s3302_s21 = smov [#allocation7]  }
  0x66   :  { %s44_s12 = sshll.u32 %s3301_s4, 4  ;;  %s64_s22 = sshll.u32 %s3302_s21, 4  ;;  %s45_s12 = int_to_ptr.vmem [resolvable:$true] %s44_s12  ;;  %s65_s22 = int_to_ptr.vmem [resolvable:$true] %s64_s22 }
  0x67   :  { %s3979_s0 = sld [smem:[#allocation31_spill]] }
  0x6d   :  { %s3124_s23 = scalar_lea.hbm %s3979_s0, 32 }
  0x6e   :  { %p3125_p12 = scmp.ne.s32.totalorder %s3979_s0, %s3124_s23  ;;  %p3128_p13 = scmp.lt.u32.totalorder %s3124_s23, %s3979_s0 }
  0x70   :  { %p3130_p0 = pnand %p3128_p13, %p3125_p12 }
  0x72   :  { %3133 = shalt.err (!%p3130_p0)
}
  0x73   :  { %s3134_s17 = scalar_lea.vmem %s45_s12, 32  ;;  %p3139_p2 = scmp.lt.s32.totalorder %s45_s12, %s45_s12 }
  0x74   :  { %p3135_p1 = scmp.ne.s32.totalorder %s45_s12, %s3134_s17  ;;  %p3140_p3 = scmp.lt.s32.totalorder %s3134_s17, %s3134_s17 }
  0x76   :  { %p3141_p4 = por %p3140_p3, %p3139_p2 }
  0x78   :  { %p3142_p5 = pnand %p3141_p4, %p3135_p1 }
  0x7a   :  { %3145 = shalt.err (!%p3142_p5)
}
  0x7b   :  { %47 = dma.hbm_to_vmem [thread:$0]  %s3979_s0, 32, %s45_s12, [#allocation3]  }
  0x7c   :  { %s3146_s4 = scalar_lea.hbm %s3952_s5, 32 }
  0x7d   :  { %p3147_p6 = scmp.ne.s32.totalorder %s3952_s5, %s3146_s4  ;;  %p3150_p7 = scmp.lt.u32.totalorder %s3146_s4, %s3952_s5 }
  0x7f   :  { %p3152_p8 = pnand %p3150_p7, %p3147_p6 }
  0x81   :  { %3155 = shalt.err (!%p3152_p8)
}
  0x82   :  { %s3156_s2 = scalar_lea.vmem %s65_s22, 32  ;;  %p3161_p10 = scmp.lt.s32.totalorder %s65_s22, %s65_s22 }
  0x83   :  { %p3157_p9 = scmp.ne.s32.totalorder %s65_s22, %s3156_s2  ;;  %p3162_p11 = scmp.lt.s32.totalorder %s3156_s2, %s3156_s2 }
  0x85   :  { %p3163_p12 = por %p3162_p11, %p3161_p10 }
  0x87   :  { %p3164_p13 = pnand %p3163_p12, %p3157_p9 }
  0x89   :  { %3167 = shalt.err (!%p3164_p13)
}
  0x8a   :  { %67 = dma.hbm_to_vmem [thread:$0]  %s3952_s5, 32, %s65_s22, [#allocation6]  }
  0x8b   :  { %s3303_s25 = smov [#allocation10]   ;;  %s3304_s26 = smov [#allocation13]  }
  0x8c   :  { %s94_s27 = sshll.u32 %s3303_s25, 4  ;;  %s116_s17 = sshll.u32 %s3304_s26, 4  ;;  %s95_s27 = int_to_ptr.vmem [resolvable:$true] %s94_s27  ;;  %s117_s17 = int_to_ptr.vmem [resolvable:$true] %s116_s17 }
  0x8d   :  { %s3168_s15 = scalar_lea.hbm %s3958_s11, 32 }
  0x8e   :  { %p3169_p0 = scmp.ne.s32.totalorder %s3958_s11, %s3168_s15  ;;  %p3172_p1 = scmp.lt.u32.totalorder %s3168_s15, %s3958_s11 }
  0x90   :  { %p3174_p2 = pnand %p3172_p1, %p3169_p0 }
  0x92   :  { %3177 = shalt.err (!%p3174_p2)
}
  0x93   :  { %s3178_s5 = scalar_lea.vmem %s95_s27, 32  ;;  %p3183_p4 = scmp.lt.s32.totalorder %s95_s27, %s95_s27 }
  0x94   :  { %p3179_p3 = scmp.ne.s32.totalorder %s95_s27, %s3178_s5  ;;  %p3184_p5 = scmp.lt.s32.totalorder %s3178_s5, %s3178_s5 }
  0x96   :  { %p3185_p6 = por %p3184_p5, %p3183_p4 }
  0x98   :  { %p3186_p7 = pnand %p3185_p6, %p3179_p3 }
  0x9a   :  { %3189 = shalt.err (!%p3186_p7)
}
  0x9b   :  { %97 = dma.hbm_to_vmem [thread:$0]  %s3958_s11, 32, %s95_s27, [#allocation9]  }
  0x9c   :  { %s3190_s12 = scalar_lea.hbm %s3960_s13, 16 }
  0x9d   :  { %p3191_p8 = scmp.ne.s32.totalorder %s3960_s13, %s3190_s12  ;;  %p3194_p9 = scmp.lt.u32.totalorder %s3190_s12, %s3960_s13 }
  0x9f   :  { %p3196_p10 = pnand %p3194_p9, %p3191_p8 }
  0xa1   :  { %3199 = shalt.err (!%p3196_p10)
}
  0xa2   :  { %s3200_s28 = scalar_lea.vmem %s117_s17, 16  ;;  %s3204_s15 = scalar_lea.vmem %s117_s17, 32 }
  0xa3   :  { %p3201_p11 = scmp.ne.s32.totalorder %s117_s17, %s3200_s28  ;;  %p3205_p12 = scmp.lt.s32.totalorder %s117_s17, %s117_s17 }
  0xa4   :  { %p3206_p13 = scmp.lt.s32.totalorder %s3204_s15, %s3200_s28 }
  0xa6   :  { %p3207_p0 = por %p3206_p13, %p3205_p12 }
  0xa8   :  { %p3208_p1 = pnand %p3207_p0, %p3201_p11 }
  0xaa   :  { %3211 = shalt.err (!%p3208_p1)
}
  0xab   :  { %119 = dma.hbm_to_vmem [thread:$0]  %s3960_s13, 16, %s117_s17, [#allocation12]  }
  0xac   :  { %s3305_s30 = smov [#allocation16]   ;;  %s3306_s21 = smov [#allocation19]  }
  0xad   :  { %s137_s4 = sshll.u32 %s3305_s30, 4  ;;  %s162_s3 = sshll.u32 %s3306_s21, 4  ;;  %s138_s4 = int_to_ptr.vmem [resolvable:$true] %s137_s4  ;;  %s163_s3 = int_to_ptr.vmem [resolvable:$true] %s162_s3 }
  0xae   :  { %s3212_s29 = scalar_lea.hbm %s3963_s16, 4096 }
  0xaf   :  { %p3213_p2 = scmp.ne.s32.totalorder %s3963_s16, %s3212_s29  ;;  %p3216_p3 = scmp.lt.u32.totalorder %s3212_s29, %s3963_s16 }
  0xb1   :  { %p3218_p4 = pnand %p3216_p3, %p3213_p2 }
  0xb3   :  { %3221 = shalt.err (!%p3218_p4)
}
  0xb4   :  { %s3222_s13 = scalar_lea.vmem %s138_s4, 4096  ;;  %p3227_p6 = scmp.lt.s32.totalorder %s138_s4, %s138_s4 }
  0xb5   :  { %p3223_p5 = scmp.ne.s32.totalorder %s138_s4, %s3222_s13  ;;  %p3228_p7 = scmp.lt.s32.totalorder %s3222_s13, %s3222_s13 }
  0xb7   :  { %p3229_p8 = por %p3228_p7, %p3227_p6 }
  0xb9   :  { %p3230_p9 = pnand %p3229_p8, %p3223_p5 }
  0xbb   :  { %3233 = shalt.err (!%p3230_p9)
}
  0xbc   :  { %143 = dma.hbm_to_vmem [thread:$0]  %s3963_s16, 4096, %s138_s4, [#allocation15], %s3297_s10, %s3297_s10, %s3298_s24  }
  0xbd   :  { %s3234_s28 = scalar_lea.hbm %s3966_s19, 16 }
  0xbe   :  { %p3235_p10 = scmp.ne.s32.totalorder %s3966_s19, %s3234_s28  ;;  %p3238_p11 = scmp.lt.u32.totalorder %s3234_s28, %s3966_s19 }
  0xc0   :  { %p3240_p12 = pnand %p3238_p11, %p3235_p10 }
  0xc2   :  { %3243 = shalt.err (!%p3240_p12)
}
  0xc3   :  { %s3244_s21 = scalar_lea.vmem %s163_s3, 16  ;;  %s3248_s5 = scalar_lea.vmem %s163_s3, 32 }
  0xc4   :  { %p3245_p13 = scmp.ne.s32.totalorder %s163_s3, %s3244_s21  ;;  %p3249_p0 = scmp.lt.s32.totalorder %s163_s3, %s163_s3 }
  0xc5   :  { %p3250_p1 = scmp.lt.s32.totalorder %s3248_s5, %s3244_s21 }
  0xc7   :  { %p3251_p2 = por %p3250_p1, %p3249_p0 }
  0xc9   :  { %p3252_p3 = pnand %p3251_p2, %p3245_p13 }
  0xcb   :  { %3255 = shalt.err (!%p3252_p3)
}
  0xcc   :  { %165 = dma.hbm_to_vmem [thread:$0]  %s3966_s19, 16, %s163_s3, [#allocation18]  }
  0xcd   :  { %3278 = dma.done.wait [#allocation3], 32  }
  0xce   :  { %3279 = vsyncadd [#allocation3], 4294967264 }
  0xcf   :  { %3280 = dma.done.wait [#allocation6], 288  }
  0xd0   :  { %3281 = vsyncadd [#allocation6], 4294967008 }
  0xd1   :  { %3282 = dma.done.wait [#allocation9], 4128  }
  0xd2   :  { %3283 = vsyncadd [#allocation9], 4294963168 }
  0xd3   :  { %3284 = dma.done.wait [#allocation12], 4112  }
  0xd4   :  { %3285 = vsyncadd [#allocation12], 4294963184 }
  0xd5   :  { %3286 = dma.done.wait [#allocation15], 4128  }
  0xd6   :  { %3287 = vsyncadd [#allocation15], 4294963168 }
  0xd7   :  { %3288 = dma.done.wait [#allocation18], 32  }
  0xd8   :  { %3289 = vsyncadd [#allocation18], 4294967264  ;;  %v3307_v0 = vmov 0.0   ;;  %vm346_vm0 = vcmask 1045504   ;;  %s3980_s4 = sld [smem:[#allocation30_spill]]  ;;  %s3981_s2 = sld [smem:[#allocation28_spill]]  ;;  %v205_v13 = vlaneseq }
  0xd9   :  { %286 = vmatprep.mubr.f32.mxu0 %v3307_v0  ;;  %417 = vmatprep.mubr.f32.mxu1 %v3307_v0  ;;  %vm215_vm1 = vcmask 64512   ;;  %v320_v4 = vld [vmem:[#allocation5 + $0x8] sm:$0x3f]  ;;  %v319_v5 = vld [vmem:[#allocation5] sm:$0x3f]  ;;  %vm333_vm2 = vcmask 48128  }
  0xda   :  { %2348 = vmatprep.subr.msk.mxu1 %vm346_vm0, %v320_v4  ;;  %s3982_s13 = sld [smem:[#allocation29_spill]]  ;;  %v3600_v11 = vld [vmem:[%s3953_s6] sm:$0xff]   ;;  %vm498_vm3 = vcmask 130048   ;;  %v206_v14 = vshrl.u32 %v205_v13, 7  ;;  %v321_v21 = vld [vmem:[#allocation7] sm:$0x3] }
  0xdb   :  { %2349 = vmatpush1.msk.msra.mxu1 %vm346_vm0, %v319_v5  ;;  %v2396_v12 = vunpack.c.l.bf16 %v3600_v11  ;;  %v203_v16 = vld [vmem:[#allocation2] sm:$0x3]  ;;  %v3625_v58 = vld [vmem:[%s3953_s6 + $0x8] sm:$0xff]   ;;  %v2397_v59 = vunpack.c.h.bf16 %v3600_v11  ;;  %vm625_vm4 = vcmask 261120   ;;  %vm3309_vm7 = vmmov 0  }
  0xdc   :  { %v3606_v15 = vsub.s32 0, %v206_v14  ;;  %v3610_v27 = vsub.s32 1, %v206_v14  ;;  %v2400_v60 = vunpack.c.l.bf16 %v3625_v58  ;;  %v2401_v61 = vunpack.c.h.bf16 %v3625_v58 }
  0xdd   :  { %vm492_vm8 = vcmask 123904   ;;  %vm1113_vm9 = vcmask 15360   ;;  %vm1120_vm10 = vcmask 1041408  }
  0xde   :  { %v202_v1 = vld [vmem:[%s3980_s4 + $0x8] sm:$0xff]  ;;  %v201_v2 = vld [vmem:[%s3980_s4] sm:$0xff]  ;;  %v208_v17 = vrot.slane %v203_v16, %v3606_v15  ;;  %v326_v26 = vrot.slane %v321_v21, %v3606_v15  ;;  %v212_v35 = vrot.slane %v203_v16, %v3610_v27  ;;  %v330_v40 = vrot.slane %v321_v21, %v3610_v27 }
  0xdf   :  { %v199_v3 = vld [vmem:[%s3981_s2] sm:$0xff]  ;;  %222 = vmatprep.subr.mxu0 %v202_v1  ;;  %v200_v7 = vld [vmem:[%s3981_s2 + $0x8] sm:$0xff] }
  0xe0   :  { %223 = vmatpush1.msra.mxu0 %v201_v2  ;;  %v315_v6 = vld [vmem:[%s3982_s13] sm:$0xff]  ;;  %v316_v8 = vld [vmem:[%s3982_s13 + $0x8] sm:$0xff]  ;;  %v317_v9 = vld [vmem:[%s3982_s13 + $0x10] sm:$0xff] }
  0xe1   :  { %2344 = vmatmul.mubr.msk.f32.vlgmr.msra.gmra.mrb[0].mxu0 %vm215_vm1, %v199_v3  ;;  %2350 = vmatmul.mubr.msk.f32.vlgmr.msra.gmra.mrb[0].mxu1 %vm333_vm2, %v315_v6  ;;  %v318_v10 = vld [vmem:[%s3982_s13 + $0x18] sm:$0xff] }
  0xe2   :  { %292 = vmatprep.mubr.f32.mxu0 %v3307_v0  ;;  %423 = vmatprep.mubr.f32.mxu1 %v3307_v0 }
  0xe5   :  { %2345 = vmatmul.mubr.msk.f32.gmra.mrb[2].mxu0 %vm215_vm1, %v200_v7  ;;  %2351 = vmatmul.mubr.msk.f32.gmra.mrb[2].mxu1 %vm333_vm2, %v316_v8 }
  0xe6   :  { %429 = vmatprep.mubr.f32.mxu1 %v3307_v0  ;;  %2568 = vmatprep.mubr.msk.f32.mxu0 %vm498_vm3, %v2396_v12 }
  0xe9   :  { %2352 = vmatmul.mubr.msk.f32.gmra.mrb[4].mxu1 %vm333_vm2, %v317_v9 }
  0xea   :  { %435 = vmatprep.mubr.f32.mxu1 %v3307_v0 }
  0xed   :  { %2353 = vmatmul.mubr.msk.f32.gmra.mrb[6].mxu1 %vm333_vm2, %v318_v10 }
 0x1b4   :  { %v288_v18 = vpop.f32.mrb[0].mxu0  ;;  %v419_v22 = vpop.f32.mrb[0].mxu1 }
 0x1b5   :  { %v289_v19 = vadd.f32 %v288_v18, %v208_v17  ;;  %v290_v20 = vpop.f32.mrb[1].mxu0  ;;  %v421_v23 = vpop.f32.mrb[1].mxu1  ;;  %v420_v62 = vadd.f32 %v419_v22, %v326_v26 }
 0x1b6   :  { %v291_v38 = vadd.f32 %v290_v20, %v212_v35  ;;  %v422_v4 = vadd.f32 %v421_v23, %v330_v40 }
 0x1b7   :  { %v2346_v24 = vmul.f32 -1.442695, %v289_v19  ;;  %v2354_v63 = vmul.f32 -1.442695, %v420_v62 }
 0x1b8   :  { %v294_v25 = vpop.f32.mrb[2].mxu0  ;;  %v425_v30 = vpop.f32.mrb[2].mxu1 }
 0x1b9   :  { %2940 = vpow2.f32 %v2346_v24  ;;  %v295_v28 = vadd.f32 %v294_v25, %v208_v17  ;;  %v296_v29 = vpop.f32.mrb[3].mxu0  ;;  %v426_v31 = vadd.f32 %v425_v30, %v326_v26  ;;  %v427_v32 = vpop.f32.mrb[3].mxu1 }
 0x1ba   :  { %v297_v42 = vadd.f32 %v296_v29, %v212_v35  ;;  %v428_v43 = vadd.f32 %v427_v32, %v330_v40  ;;  %v2403_v29 = vld [vmem:[%s3954_s7] sm:$0xff]  }
 0x1bb   :  { %v2347_v33 = vmul.f32 -1.442695, %v295_v28  ;;  %v2355_v34 = vmul.f32 -1.442695, %v426_v31  ;;  %v3648_v30 = vunpack.c.l.bf16 %v2403_v29 }
 0x1bc   :  { %v431_v36 = vpop.f32.mrb[4].mxu1 }
 0x1bd   :  { %2942 = vpow2.f32 %v2347_v33  ;;  %v433_v37 = vpop.f32.mrb[5].mxu1  ;;  %v432_v1 = vadd.f32 %v431_v36, %v326_v26 }
 0x1be   :  { %2944 = vpow2.f32 %v2355_v34  ;;  %v434_v13 = vadd.f32 %v433_v37, %v330_v40 }
 0x1bf   :  { %2946 = vtanh.f32 %v291_v38  ;;  %v2356_v2 = vmul.f32 -1.442695, %v432_v1 }
 0x1c0   :  { %v437_v6 = vpop.f32.mrb[6].mxu1 }
 0x1c1   :  { %v438_v7 = vadd.f32 %v437_v6, %v326_v26  ;;  %v439_v8 = vpop.f32.mrb[7].mxu1 }
 0x1c2   :  { %v440_v16 = vadd.f32 %v439_v8, %v330_v40 }
 0x1c3   :  { %v2941_v39 = vpop.eup %2940  ;;  %v2357_v9 = vmul.f32 -1.442695, %v438_v7 }
 0x1c4   :  { %v305_v41 = vadd.f32 1.0, %v2941_v39 }
 0x1c6   :  { %2948 = vrcp.f32 %v305_v41 }
 0x1c7   :  { %v2943_v44 = vpop.eup %2942  ;;  %2950 = vtanh.f32 %v297_v42 }
 0x1c8   :  { %v2945_v45 = vpop.eup %2944  ;;  %v306_v46 = vadd.f32 1.0, %v2943_v44  ;;  %2952 = vtanh.f32 %v428_v43 }
 0x1c9   :  { %v455_v47 = vadd.f32 1.0, %v2945_v45  ;;  %v2947_v48 = vpop.eup %2946 }
 0x1ca   :  { %2954 = vrcp.f32 %v306_v46 }
 0x1cb   :  { %2956 = vrcp.f32 %v455_v47 }
 0x1cc   :  { %2958 = vpow2.f32 %v2354_v63 }
 0x1cd   :  { %2960 = vpow2.f32 %v2356_v2 }
 0x1ce   :  { %2962 = vtanh.f32 %v422_v4 }
 0x1d0   :  { %v2949_v49 = vpop.eup %2948 }
 0x1d1   :  { %v3614_v50 = vmul.f32 %v2949_v49, %v2947_v48  ;;  %v2951_v51 = vpop.eup %2950 }
 0x1d2   :  { %v2953_v52 = vpop.eup %2952 }
 0x1d4   :  { %v2955_v53 = vpop.eup %2954 }
 0x1d5   :  { %v2957_v54 = vpop.eup %2956  ;;  %v3616_v55 = vmul.f32 %v2955_v53, %v2951_v51 }
 0x1d6   :  { %v3618_v56 = vmul.f32 %v2957_v54, %v2953_v52  ;;  %v2959_v3 = vpop.eup %2958 }
 0x1d7   :  { %v2711_v57 = vpack.c.bf16 %v3616_v55, %v3614_v50  ;;  %v454_v5 = vadd.f32 1.0, %v2959_v3  ;;  %v2961_v10 = vpop.eup %2960 }
 0x1d8   :  { %v456_v14 = vadd.f32 1.0, %v2961_v10  ;;  %v2963_v17 = vpop.eup %2962 }
 0x1d9   :  { %2712 = vmatprep.subr.bf16.mxu0 %v2711_v57  ;;  %2964 = vrcp.f32 %v454_v5 }
 0x1da   :  { %2714 = vmatpush3.bf16.msra.mxu0 %v2711_v57  ;;  %2966 = vpow2.f32 %v2357_v9 }
 0x1db   :  { %2968 = vtanh.f32 %v434_v13 }
 0x1dc   :  { %2970 = vrcp.f32 %v456_v14 }
 0x1dd   :  { %2569 = vmatmul.mubr.msk.f32.vlgmr.msra.gmra.mrb[4].mxu0 %vm498_vm3, %v2397_v59  ;;  %2972 = vtanh.f32 %v440_v16 }
 0x1de   :  { %2571 = vmatprep.mubr.msk.f32.mxu0 %vm498_vm3, %v2400_v60 }
 0x1e1   :  { %2572 = vmatmul.mubr.msk.f32.gmra.mrb[6].mxu0 %vm498_vm3, %v2401_v61 }
 0x1e2   :  { %2582 = vmatprep.mubr.msk.f32.mxu0 %vm625_vm4, %v3648_v30 }
 0x1e3   :  { %v2965_v18 = vpop.eup %2964 }
 0x1e4   :  { %v2967_v19 = vpop.eup %2966  ;;  %v3639_v21 = vmul.f32 %v2965_v18, %v2963_v17 }
 0x1e5   :  { %v457_v20 = vadd.f32 1.0, %v2967_v19  ;;  %v2969_v22 = vpop.eup %2968 }
 0x1e6   :  { %v2971_v23 = vpop.eup %2970 }
 0x1e7   :  { %2974 = vrcp.f32 %v457_v20  ;;  %v3641_v24 = vmul.f32 %v2971_v23, %v2969_v22  ;;  %v2973_v25 = vpop.eup %2972 }
 0x1f1   :  { %v2975_v26 = vpop.eup %2974 }
 0x1f2   :  { %v3643_v28 = vmul.f32 %v2975_v26, %v2973_v25  ;;  %v3656_v25 = vunpack.c.h.bf16 %v2403_v29  ;;  %v799_v26 = vld [vmem:[#allocation8 + $0x8] sm:$0xff] }
 0x2b0   :  { %v2570_v31 = vpop.f32.mrb[4].mxu0 }
 0x2b1   :  { %v583_v32 = vadd.f32 %v2570_v31, %v3618_v56  ;;  %v577_v33 = vpop.f32.mrb[5].mxu0  ;;  %v801_v31 = vld [vmem:[#allocation8 + $0x18] sm:$0xff] }
 0x2b2   :  { %v578_v34 = vadd.f32 %v577_v33, %v3639_v21  ;;  %v798_v33 = vld [vmem:[#allocation8] sm:$0xff] }
 0x2b3   :  { %v597_v35 = vmax.f32 %v583_v32, 0.0  ;;  %v2731_v32 = vpack.c.bf16 %v801_v31, %v799_v26  ;;  %v939_v31 = vld [vmem:[#allocation11 + $0x80] sm:$0xff] }
 0x2b4   :  { %v596_v36 = vmax.f32 %v578_v34, 0.0  ;;  %v2573_v37 = vpop.f32.mrb[6].mxu0  ;;  %v800_v34 = vld [vmem:[#allocation8 + $0x10] sm:$0xff] }
 0x2b5   :  { %v601_v38 = vadd.f32 1e-07, %v597_v35  ;;  %v593_v39 = vadd.f32 %v2573_v37, %v3643_v28  ;;  %v587_v40 = vpop.f32.mrb[7].mxu0  ;;  %v803_v35 = vld [vmem:[#allocation8 + $0x28] sm:$0xff]  ;;  %v2733_v29 = vpack.c.bf16 %v800_v34, %v798_v33 }
 0x2b6   :  { %v600_v41 = vadd.f32 1e-07, %v596_v36  ;;  %v588_v42 = vadd.f32 %v587_v40, %v3641_v24  ;;  %v805_v36 = vld [vmem:[#allocation8 + $0x38] sm:$0xff]  ;;  %v807_v40 = vld [vmem:[#allocation8 + $0x48] sm:$0xff] }
 0x2b7   :  { %v599_v43 = vmax.f32 %v593_v39, 0.0  ;;  %v2735_v37 = vpack.c.bf16 %v805_v36, %v803_v35  ;;  %v804_v39 = vld [vmem:[#allocation8 + $0x30] sm:$0xff]  ;;  %v923_v33 = vld [vmem:[#allocation11] sm:$0xff] }
 0x2b8   :  { %v604_v44 = vmax.f32 %v600_v41, %v601_v38  ;;  %v598_v45 = vmax.f32 %v588_v42, 0.0  ;;  %v924_v35 = vld [vmem:[#allocation11 + $0x8] sm:$0xff]  ;;  %v941_v36 = vld [vmem:[#allocation11 + $0x90] sm:$0xff] }
 0x2b9   :  { %v603_v46 = vadd.f32 1e-07, %v599_v43 }
 0x2ba   :  { %v602_v47 = vadd.f32 1e-07, %v598_v45  ;;  %v808_v45 = vld [vmem:[#allocation8 + $0x50] sm:$0xff] }
 0x2bc   :  { %v605_v48 = vmax.f32 %v602_v47, %v603_v46 }
 0x2be   :  { %v606_v49 = vmax.f32 %v604_v44, %v605_v48  ;;  %v806_v44 = vld [vmem:[#allocation8 + $0x40] sm:$0xff] }
 0x2bf   :  { %v2741_v48 = vpack.c.bf16 %v808_v45, %v806_v44  ;;  %v927_v45 = vld [vmem:[#allocation11 + $0x20] sm:$0xff] }
 0x2c0   :  { %v607_v51 = vrot.slane %v606_v49, 4 }
 0x2c2   :  { %v608_v52 = vmax.f32 %v606_v49, %v607_v51  ;;  %v810_v51 = vld [vmem:[#allocation8 + $0x60] sm:$0xff] }
 0x2c4   :  { %v609_v53 = vrot.slane %v608_v52, 2 }
 0x2c6   :  { %v610_v54 = vmax.f32 %v608_v52, %v609_v53  ;;  %v812_v52 = vld [vmem:[#allocation8 + $0x70] sm:$0xff] }
 0x2c7   :  { %v2745_v53 = vpack.c.bf16 %v812_v52, %v810_v51  ;;  %v929_v52 = vld [vmem:[#allocation11 + $0x30] sm:$0xff] }
 0x2c8   :  { %v611_v57 = vrot.slane %v610_v54, 1 }
 0x2ca   :  { %v612_v62 = vmax.f32 %v610_v54, %v611_v57  ;;  %v815_v54 = vld [vmem:[#allocation8 + $0x88] sm:$0xff]  ;;  %v817_v57 = vld [vmem:[#allocation8 + $0x98] sm:$0xff] }
 0x2cc   :  { %v615_v63 = vsub.f32 %v602_v47, %v612_v62  ;;  %v613_v1 = vsub.f32 %v600_v41, %v612_v62  ;;  %v614_v2 = vsub.f32 %v601_v38, %v612_v62  ;;  %v616_v3 = vsub.f32 %v603_v46, %v612_v62  ;;  %v814_v62 = vld [vmem:[#allocation8 + $0x80] sm:$0xff] }
 0x2ce   :  { %v621_v4 = vmul.f32 1.442695, %v615_v63  ;;  %v617_v5 = vmul.f32 1.442695, %v613_v1  ;;  %v619_v6 = vmul.f32 1.442695, %v614_v2  ;;  %v2747_v63 = vpack.c.bf16 %v817_v57, %v815_v54 }
 0x2cf   :  { %v623_v7 = vmul.f32 1.442695, %v616_v3  ;;  %v816_v1 = vld [vmem:[#allocation8 + $0x90] sm:$0xff]  ;;  %v819_v2 = vld [vmem:[#allocation8 + $0xa8] sm:$0xff]  ;;  %v821_v3 = vld [vmem:[#allocation8 + $0xb8] sm:$0xff] }
 0x2d0   :  { %2976 = vpow2.f32 %v621_v4  ;;  %v2749_v4 = vpack.c.bf16 %v816_v1, %v814_v62  ;;  %v947_v54 = vld [vmem:[#allocation11 + $0xc0] sm:$0xff]  ;;  %v948_v57 = vld [vmem:[#allocation11 + $0xc8] sm:$0xff] }
 0x2d1   :  { %2978 = vpow2.f32 %v617_v5  ;;  %v2751_v5 = vpack.c.bf16 %v821_v3, %v819_v2  ;;  %v931_v1 = vld [vmem:[#allocation11 + $0x40] sm:$0xff]  ;;  %v932_v2 = vld [vmem:[#allocation11 + $0x48] sm:$0xff]  ;;  %v949_v3 = vld [vmem:[#allocation11 + $0xd0] sm:$0xff] }
 0x2d2   :  { %2980 = vpow2.f32 %v619_v6  ;;  %v818_v6 = vld [vmem:[#allocation8 + $0xa0] sm:$0xff] }
 0x2d3   :  { %2982 = vpow2.f32 %v623_v7  ;;  %v820_v7 = vld [vmem:[#allocation8 + $0xb0] sm:$0xff] }
 0x2da   :  { %v2977_v8 = vpop.eup %2976 }
 0x2db   :  { %v2979_v9 = vpop.eup %2978  ;;  %v709_v10 = vmul.f32 %v2977_v8, %v602_v47  ;;  %v813_v47 = vld [vmem:[#allocation8 + $0x78] sm:$0xff] }
 0x2dc   :  { %v2981_v13 = vpop.eup %2980  ;;  %v707_v14 = vmul.f32 %v2979_v9, %v600_v41  ;;  %v809_v41 = vld [vmem:[#allocation8 + $0x58] sm:$0xff] }
 0x2dd   :  { %v2983_v16 = vpop.eup %2982  ;;  %v2715_v17 = vpack.c.bf16 %v2981_v13, %v2979_v9  ;;  %v708_v18 = vmul.f32 %v2981_v13, %v601_v38  ;;  %v802_v38 = vld [vmem:[#allocation8 + $0x20] sm:$0xff]  ;;  %v2739_v43 = vpack.c.bf16 %v809_v41, %v807_v40  ;;  %v823_v9 = vld [vmem:[#allocation8 + $0xc8] sm:$0xff] }
 0x2de   :  { %v2719_v19 = vpack.c.bf16 %v2983_v16, %v2977_v8  ;;  %v710_v20 = vmul.f32 %v2983_v16, %v603_v46  ;;  %v2737_v42 = vpack.c.bf16 %v804_v39, %v802_v38  ;;  %v811_v46 = vld [vmem:[#allocation8 + $0x68] sm:$0xff]  ;;  %v2753_v8 = vpack.c.bf16 %v820_v7, %v818_v6  ;;  %v824_v16 = vld [vmem:[#allocation8 + $0xd0] sm:$0xff]  ;;  %v926_v40 = vld [vmem:[#allocation11 + $0x18] sm:$0xff] }
 0x2df   :  { %2716 = vmatprep.subr.bf16.mxu0 %v2715_v17  ;;  %v2723_v22 = vpack.c.bf16 %v708_v18, %v707_v14  ;;  %v2743_v49 = vpack.c.bf16 %v813_v47, %v811_v46  ;;  %v822_v14 = vld [vmem:[#allocation8 + $0xc0] sm:$0xff]  ;;  %v827_v18 = vld [vmem:[#allocation8 + $0xe8] sm:$0xff]  ;;  %v925_v39 = vld [vmem:[#allocation11 + $0x10] sm:$0xff] }
 0x2e0   :  { %2718 = vmatpush3.bf16.msra.mxu0 %v2715_v17  ;;  %v2727_v23 = vpack.c.bf16 %v710_v20, %v709_v10  ;;  %v825_v10 = vld [vmem:[#allocation8 + $0xd8] sm:$0xff]  ;;  %v2757_v17 = vpack.c.bf16 %v824_v16, %v822_v14  ;;  %v943_v41 = vld [vmem:[#allocation11 + $0xa0] sm:$0xff]  ;;  %v928_v46 = vld [vmem:[#allocation11 + $0x28] sm:$0xff] }
 0x2e1   :  { %2720 = vmatprep.subr.bf16.mxu0 %v2719_v19  ;;  %v2755_v13 = vpack.c.bf16 %v825_v10, %v823_v9  ;;  %v945_v47 = vld [vmem:[#allocation11 + $0xb0] sm:$0xff]  ;;  %v951_v9 = vld [vmem:[#allocation11 + $0xe0] sm:$0xff]  ;;  %v952_v10 = vld [vmem:[#allocation11 + $0xe8] sm:$0xff] }
 0x2e2   :  { %v933_v7 = vld [vmem:[#allocation11 + $0x50] sm:$0xff]  ;;  %v2787_v14 = vpack.c.bf16 %v952_v10, %v951_v9  ;;  %v2366_v9 = vld [vmem:[#allocation13] ss:$0 sm:$0xff] }
 0x2e4   :  { %2722 = vmatpush3.bf16.msra.mxu0 %v2719_v19  ;;  %v829_v19 = vld [vmem:[#allocation8 + $0xf8] sm:$0xff] }
 0x2e5   :  { %2724 = vmatprep.subr.bf16.mxu0 %v2723_v22  ;;  %v2759_v20 = vpack.c.bf16 %v829_v19, %v827_v18 }
 0x2e7   :  { %2583 = vmatmul.mubr.msk.f32.vlgmr.msra.gmra.mrb[8].mxu0 %vm625_vm4, %v3656_v25 }
 0x2e8   :  { %2726 = vmatpush3.bf16.msra.mxu0 %v2723_v22  ;;  %2593 = vmatprep.mubr.msk.f32.mxu0 %vm625_vm4, %v3648_v30  ;;  %v826_v22 = vld [vmem:[#allocation8 + $0xe0] sm:$0xff] }
 0x2e9   :  { %2728 = vmatprep.subr.bf16.mxu0 %v2727_v23 }
 0x2ec   :  { %2730 = vmatpush3.bf16.msra.mxu0 %v2727_v23  ;;  %v828_v23 = vld [vmem:[#allocation8 + $0xf0] sm:$0xff] }
 0x2ed   :  { %2732 = vmatprep.subr.bf16.mxu0 %v2731_v32  ;;  %v2761_v26 = vpack.c.bf16 %v828_v23, %v826_v22  ;;  %v940_v32 = vld [vmem:[#allocation11 + $0x88] sm:$0xff] }
 0x2ee   :  { %v2763_v34 = vpack.c.bf16 %v940_v32, %v939_v31 }
 0x2ef   :  { %2594 = vmatmul.mubr.msk.f32.vlgmr.msra.gmra.mrb[10].mxu0 %vm625_vm4, %v3656_v25 }
 0x2f0   :  { %2734 = vmatpush1.bf16.msra.mxu0 %v2733_v29  ;;  %906 = vmatprep.mubr.f32.mxu0 %v3307_v0  ;;  %v942_v29 = vld [vmem:[#allocation11 + $0x98] sm:$0xff] }
 0x2f1   :  { %2736 = vmatprep.subr.bf16.mxu0 %v2735_v37  ;;  %v2765_v37 = vpack.c.bf16 %v924_v35, %v923_v33  ;;  %v2767_v38 = vpack.c.bf16 %v942_v29, %v941_v36  ;;  %2764 = vmatprep.subr.bf16.mxu1 %v2763_v34  ;;  %v935_v29 = vld [vmem:[#allocation11 + $0x60] sm:$0xff] }
 0x2f3   :  { %2766 = vmatpush3.bf16.msra.mxu1 %v2765_v37  ;;  %v936_v37 = vld [vmem:[#allocation11 + $0x68] sm:$0xff] }
 0x2f4   :  { %2738 = vmatpush1.bf16.msra.mxu0 %v2737_v42  ;;  %v944_v42 = vld [vmem:[#allocation11 + $0xa8] sm:$0xff]  ;;  %2768 = vmatprep.subr.bf16.mxu1 %v2767_v38  ;;  %v2789_v38 = vpack.c.bf16 %v936_v37, %v935_v29 }
 0x2f5   :  { %2740 = vmatprep.subr.bf16.mxu0 %v2739_v43  ;;  %v2769_v43 = vpack.c.bf16 %v926_v40, %v925_v39  ;;  %v2771_v44 = vpack.c.bf16 %v944_v42, %v943_v41  ;;  %v953_v39 = vld [vmem:[#allocation11 + $0xf0] sm:$0xff]  ;;  %v954_v40 = vld [vmem:[#allocation11 + $0xf8] sm:$0xff] }
 0x2f6   :  { %v2791_v41 = vpack.c.bf16 %v954_v40, %v953_v39  ;;  %v937_v42 = vld [vmem:[#allocation11 + $0x70] sm:$0xff] }
 0x2f7   :  { %2770 = vmatpush3.bf16.msra.mxu1 %v2769_v43  ;;  %v938_v43 = vld [vmem:[#allocation11 + $0x78] sm:$0xff] }
 0x2f8   :  { %2742 = vmatpush1.bf16.msra.mxu0 %v2741_v48  ;;  %v946_v48 = vld [vmem:[#allocation11 + $0xb8] sm:$0xff]  ;;  %2772 = vmatprep.subr.bf16.mxu1 %v2771_v44  ;;  %v2793_v44 = vpack.c.bf16 %v938_v43, %v937_v42 }
 0x2f9   :  { %2744 = vmatprep.subr.bf16.mxu0 %v2743_v49  ;;  %v2773_v49 = vpack.c.bf16 %v928_v46, %v927_v45  ;;  %v2775_v51 = vpack.c.bf16 %v946_v48, %v945_v47  ;;  %v830_v45 = vld [vmem:[#allocation10] sm:$0x3] }
 0x2fa   :  { %v839_v46 = vrot.slane %v830_v45, %v3610_v27 }
 0x2fb   :  { %2774 = vmatpush3.bf16.msra.mxu1 %v2773_v49 }
 0x2fc   :  { %2746 = vmatpush1.bf16.msra.mxu0 %v2745_v53  ;;  %v930_v53 = vld [vmem:[#allocation11 + $0x38] sm:$0xff]  ;;  %2776 = vmatprep.subr.bf16.mxu1 %v2775_v51 }
 0x2fd   :  { %2748 = vmatprep.subr.bf16.mxu0 %v2747_v63  ;;  %v2777_v62 = vpack.c.bf16 %v930_v53, %v929_v52  ;;  %v2779_v63 = vpack.c.bf16 %v948_v57, %v947_v54 }
 0x2ff   :  { %2778 = vmatpush3.bf16.msra.mxu1 %v2777_v62 }
 0x300   :  { %2750 = vmatpush1.bf16.msra.mxu0 %v2749_v4  ;;  %v950_v4 = vld [vmem:[#allocation11 + $0xd8] sm:$0xff]  ;;  %2780 = vmatprep.subr.bf16.mxu1 %v2779_v63 }
 0x301   :  { %2752 = vmatprep.subr.bf16.mxu0 %v2751_v5  ;;  %v2781_v5 = vpack.c.bf16 %v932_v2, %v931_v1  ;;  %v2783_v6 = vpack.c.bf16 %v950_v4, %v949_v3  ;;  %v3308_v2 = vmov 0.0|0.0   ;;  %v486_v3 = vld [vmem:[%s3955_s8] sm:$0x1] }
 0x302   :  { %v3676_v4 = vunpack.c.l.bf16 %v486_v3 }
 0x303   :  { %2782 = vmatpush3.bf16.msra.mxu1 %v2781_v5 }
 0x304   :  { %2754 = vmatpush1.bf16.msra.mxu0 %v2753_v8  ;;  %v934_v8 = vld [vmem:[#allocation11 + $0x58] sm:$0xff]  ;;  %2784 = vmatprep.subr.bf16.mxu1 %v2783_v6  ;;  %v493_v5 = vsel %vm492_vm8, %v3676_v4, 0.0 }
 0x305   :  { %2756 = vmatprep.subr.bf16.mxu0 %v2755_v13  ;;  %v2785_v13 = vpack.c.bf16 %v934_v8, %v933_v7  ;;  %494 = vadd.xlane.f32.xlu0 %v493_v5 }
 0x307   :  { %2786 = vmatpush3.bf16.msra.mxu1 %v2785_v13 }
 0x308   :  { %2758 = vmatpush1.bf16.msra.mxu0 %v2757_v17  ;;  %2788 = vmatprep.subr.bf16.mxu1 %v2787_v14 }
 0x309   :  { %2760 = vmatprep.subr.bf16.mxu0 %v2759_v20 }
 0x30b   :  { %2790 = vmatpush3.bf16.msra.mxu1 %v2789_v38 }
 0x30c   :  { %2762 = vmatpush1.bf16.msra.mxu0 %v2761_v26  ;;  %2792 = vmatprep.subr.bf16.mxu1 %v2791_v41 }
 0x30d   :  { %2795 = vmatprep.subr.bf16.mxu0 %v3308_v2 }
 0x30f   :  { %2794 = vmatpush3.bf16.msra.mxu1 %v2793_v44 }
 0x3ba   :  { %v2584_v16 = vpop.f32.mrb[8].mxu0 }
 0x3bb   :  { %v698_v17 = vpop.f32.mrb[9].mxu0  ;;  %vm787_vm5 = vcmp.gt.f32.partialorder %v2584_v16, 0.0 }
 0x3bc   :  { %v791_v18 = vsel %vm787_vm5, %v2584_v16, 1.0  ;;  %vm786_vm6 = vcmp.gt.f32.partialorder %v698_v17, 0.0 }
 0x3bd   :  { %2984 = vrcp.f32 %v791_v18  ;;  %v790_v19 = vsel %vm786_vm6, %v698_v17, 1.0 }
 0x3be   :  { %2986 = vrcp.f32 %v790_v19 }
 0x3c2   :  { %v2595_v20 = vpop.f32.mrb[10].mxu0 }
 0x3c3   :  { %v789_v22 = vsel %vm787_vm5, %v2595_v20, 0.0  ;;  %v777_v23 = vpop.f32.mrb[11].mxu0 }
 0x3c4   :  { %v788_v26 = vsel %vm786_vm6, %v777_v23, 0.0 }
 0x3c7   :  { %v2985_v31 = vpop.eup %2984 }
 0x3c8   :  { %v2987_v32 = vpop.eup %2986  ;;  %v795_v33 = vmul.f32 %v2985_v31, %v789_v22  ;;  %v2407_v22 = vld [vmem:[%s3956_s9] sm:$0xff]  }
 0x3c9   :  { %v794_v34 = vmul.f32 %v2987_v32, %v788_v26  ;;  %v3687_v23 = vunpack.c.l.bf16 %v2407_v22  ;;  %v495_v26 = vpop.xlane.xlu0 %494 }
 0x3ca   :  { %v797_v36 = vadd.f32 %v795_v33, %v3616_v55  ;;  %2988 = vrcp.f32 %v495_v26 }
 0x3cb   :  { %v796_v35 = vadd.f32 %v794_v34, %v3614_v50  ;;  %v835_v50 = vrot.slane %v830_v45, %v3606_v15  ;;  %vm2183_vm14 = vcmp.gt.f32.partialorder %v3687_v23, 0.0 }
 0x3cd   :  { %907 = vmatmul.mubr.f32.vlgmr.msra.gmra.mrb[12].mxu0 %v796_v35  ;;  %v3694_v35 = vunpack.c.h.bf16 %v2407_v22 }
 0x3ce   :  { %912 = vmatprep.mubr.f32.mxu0 %v3307_v0 }
 0x3cf   :  { %vm2184_vm13 = vcmp.gt.f32.partialorder %v3694_v35, 0.0 }
 0x3d1   :  { %913 = vmatmul.mubr.f32.gmra.mrb[14].mxu0 %v797_v36 }
 0x3d2   :  { %2600 = vmatprep.mubr.msk.f32.mxu0 %vm3309_vm7, %v3307_v0 }
 0x3d4   :  { %v3691_v31 = vpop.eup %2988 }
 0x4a0   :  { %v908_v47 = vpop.f32.mrb[12].mxu0 }
 0x4a1   :  { %v909_v55 = vadd.f32 %v908_v47, %v835_v50  ;;  %v910_v48 = vpop.f32.mrb[13].mxu0 }
 0x4a2   :  { %v911_v49 = vadd.f32 %v910_v48, %v839_v46 }
 0x4a3   :  { %v919_v53 = vmax.f32 %v909_v55, 0.0 }
 0x4a4   :  { %v920_v51 = vmax.f32 %v911_v49, 0.0  ;;  %v914_v52 = vpop.f32.mrb[14].mxu0 }
 0x4a5   :  { %v915_v54 = vadd.f32 %v914_v52, %v835_v50  ;;  %v916_v57 = vpop.f32.mrb[15].mxu0 }
 0x4a6   :  { %v917_v62 = vadd.f32 %v916_v57, %v839_v46  ;;  %1026 = vmatprep.mubr.f32.mxu1 %v920_v51 }
 0x4a7   :  { %1027 = vmatmul.mubr.f32.vlgmr.msra.gmra.mrb[8].mxu1 %v919_v53  ;;  %v921_v1 = vmax.f32 %v915_v54, 0.0 }
 0x4a8   :  { %v922_v63 = vmax.f32 %v917_v62, 0.0 }
 0x4aa   :  { %1031 = vmatprep.mubr.f32.mxu1 %v922_v63 }
 0x4ab   :  { %1032 = vmatmul.mubr.f32.gmra.mrb[10].mxu1 %v921_v1 }
 0x4ac   :  { %2605 = vmatprep.mubr.msk.f32.mxu1 %vm1113_vm9, %v3687_v23 }
 0x57a   :  { %v2461_v6 = vpop.f32.mrb[8].mxu1 }
 0x57b   :  { %v2462_v7 = vpop.f32.mrb[9].mxu1 }
 0x57c   :  { %v2463_v8 = vadd.f32 %v2462_v7, %v2461_v6 }
 0x57e   :  { %v2464_v10 = vpop.f32.mrb[10].mxu1  ;;  %v1029_v14 = vadd.f32 %v2463_v8, %v2366_v9 }
 0x57f   :  { %v2465_v13 = vpop.f32.mrb[11].mxu1 }
 0x580   :  { %v2466_v16 = vadd.f32 %v2465_v13, %v2464_v10  ;;  %v1037_v18 = vmax.f32 %v1029_v14, 0.0 }
 0x582   :  { %v1034_v17 = vadd.f32 %v2466_v16, %v2366_v9 }
 0x584   :  { %v1038_v19 = vmax.f32 %v1034_v17, 0.0 }
 0x586   :  { %v2796_v20 = vpack.c.bf16 %v1038_v19, %v1037_v18 }
 0x588   :  { %2797 = vmatpush3.bf16.msra.mxu0 %v2796_v20 }
 0x589   :  { %2798 = vmatprep.subr.bf16.mxu0 %v3308_v2 }
 0x58b   :  { %2601 = vmatmul.mubr.msk.f32.vlgmr.msra.gmra.mrb[16].mxu0 %vm498_vm3, %v3676_v4 }
 0x58c   :  { %2612 = vmatprep.mubr.msk.f32.mxu0 %vm3309_vm7, %v3307_v0 }
 0x65e   :  { %v1108_v32 = vpop.f32.mrb[16].mxu0 }
 0x65f   :  { %v1112_v33 = vmul.f32 %v3691_v31, %v1108_v32  ;;  %v2602_v34 = vpop.f32.mrb[17].mxu0 }
 0x661   :  { %2603 = vmatprep.subr.msk.mxu1 %vm1120_vm10, %v1112_v33 }
 0x662   :  { %2604 = vmatpush3.msk.msra.mxu1 %vm1120_vm10, %v1112_v33 }
 0x663   :  { %2606 = vmatmul.mubr.msk.f32.vlgmr.msra.gmra.mrb[12].mxu1 %vm1113_vm9, %v3694_v35 }
 0x664   :  { %2617 = vmatprep.mubr.msk.f32.mxu1 %vm1113_vm9, %v3687_v23 }
 0x736   :  { %v2607_v36 = vpop.f32.mrb[12].mxu1 }
 0x737   :  { %v1200_v29 = vsub.f32 %v1038_v19, %v2607_v36  ;;  %v1190_v37 = vpop.f32.mrb[13].mxu1 }
 0x738   :  { %v1199_v38 = vsub.f32 %v1037_v18, %v1190_v37 }
 0x739   :  { %v1202_v39 = vmul.f32 %v1200_v29, %v1200_v29 }
 0x73a   :  { %v1201_v40 = vmul.f32 %v1199_v38, %v1199_v38 }
 0x73c   :  { %v2799_v41 = vpack.c.bf16 %v1202_v39, %v1201_v40 }
 0x73e   :  { %2800 = vmatpush3.bf16.msra.mxu0 %v2799_v41 }
 0x741   :  { %2613 = vmatmul.mubr.msk.f32.vlgmr.msra.gmra.mrb[18].mxu0 %vm498_vm3, %v3676_v4 }
 0x742   :  { %2624 = vmatprep.mubr.msk.f32.mxu0 %vm498_vm3, %v2396_v12 }
 0x814   :  { %v1269_v42 = vpop.f32.mrb[18].mxu0 }
 0x815   :  { %v1273_v43 = vmul.f32 %v3691_v31, %v1269_v42  ;;  %v2614_v44 = vpop.f32.mrb[19].mxu0  ;;  %v1637_v42 = vld [vmem:[%s3961_s14 + $0x8] sm:$0xff] }
 0x817   :  { %2615 = vmatprep.subr.msk.mxu1 %vm1120_vm10, %v1273_v43 }
 0x818   :  { %2616 = vmatpush3.msk.msra.mxu1 %vm1120_vm10, %v1273_v43  ;;  %v1639_v43 = vld [vmem:[%s3961_s14 + $0x18] sm:$0xff] }
 0x819   :  { %2618 = vmatmul.mubr.msk.f32.vlgmr.msra.gmra.mrb[14].mxu1 %vm1113_vm9, %v3694_v35 }
 0x81a   :  { %2638 = vmatprep.mubr.msk.f32.mxu1 %vm625_vm4, %v3648_v30 }
 0x8ec   :  { %v2619_v45 = vpop.f32.mrb[14].mxu1 }
 0x8ed   :  { %v1349_v50 = vadd.f32 1e-05, %v2619_v45  ;;  %v1343_v46 = vpop.f32.mrb[15].mxu1 }
 0x8ee   :  { %v1344_v47 = vadd.f32 1e-05, %v1343_v46  ;;  %v1636_v46 = vld [vmem:[%s3961_s14] sm:$0xff] }
 0x8ef   :  { %2990 = vrsqrt.f32 %v1349_v50  ;;  %v2821_v50 = vpack.c.bf16 %v1639_v43, %v1637_v42  ;;  %v1762_v42 = vld [vmem:[#allocation16 + $0x8] sm:$0xff]  ;;  %v1779_v43 = vld [vmem:[#allocation16 + $0x90] sm:$0xff] }
 0x8f0   :  { %2992 = vrsqrt.f32 %v1344_v47  ;;  %v1638_v47 = vld [vmem:[%s3961_s14 + $0x10] sm:$0xff] }
 0x8f9   :  { %v2991_v12 = vpop.eup %2990 }
 0x8fa   :  { %v2993_v55 = vpop.eup %2992  ;;  %v3714_v48 = vmul.f32 %v2991_v12, %v1200_v29  ;;  %v1641_v12 = vld [vmem:[%s3961_s14 + $0x28] sm:$0xff] }
 0x8fb   :  { %v3716_v49 = vmul.f32 %v2993_v55, %v1199_v38  ;;  %v1643_v55 = vld [vmem:[%s3961_s14 + $0x38] sm:$0xff] }
 0x8fd   :  { %v2801_v51 = vpack.c.bf16 %v3714_v48, %v3716_v49 }
 0x8ff   :  { %2802 = vmatprep.subr.bf16.mxu0 %v2801_v51 }
 0x900   :  { %2804 = vmatpush3.bf16.msra.mxu0 %v2801_v51  ;;  %v2823_v51 = vpack.c.bf16 %v1638_v47, %v1636_v46  ;;  %v1763_v46 = vld [vmem:[#allocation16 + $0x10] sm:$0xff]  ;;  %v1764_v47 = vld [vmem:[#allocation16 + $0x18] sm:$0xff] }
 0x903   :  { %2625 = vmatmul.mubr.msk.f32.vlgmr.msra.gmra.mrb[20].mxu0 %vm498_vm3, %v2397_v59 }
 0x904   :  { %2627 = vmatprep.mubr.msk.f32.mxu0 %vm498_vm3, %v2400_v60 }
 0x907   :  { %2628 = vmatmul.mubr.msk.f32.gmra.mrb[22].mxu0 %vm498_vm3, %v2401_v61 }
 0x908   :  { %2649 = vmatprep.mubr.msk.f32.mxu0 %vm625_vm4, %v3648_v30 }
 0x9d6   :  { %v2626_v52 = vpop.f32.mrb[20].mxu0 }
 0x9d7   :  { %v1428_v53 = vadd.f32 %v2626_v52, %v3618_v56  ;;  %v1422_v54 = vpop.f32.mrb[21].mxu0  ;;  %v2825_v52 = vpack.c.bf16 %v1643_v55, %v1641_v12  ;;  %v1781_v12 = vld [vmem:[#allocation16 + $0xa0] sm:$0xff]  ;;  %v1782_v55 = vld [vmem:[#allocation16 + $0xa8] sm:$0xff] }
 0x9d8   :  { %v1423_v57 = vadd.f32 %v1422_v54, %v3639_v21  ;;  %v1642_v54 = vld [vmem:[%s3961_s14 + $0x30] sm:$0xff] }
 0x9d9   :  { %v1442_v11 = vmax.f32 %v1428_v53, 0.0  ;;  %v1640_v53 = vld [vmem:[%s3961_s14 + $0x20] sm:$0xff] }
 0x9da   :  { %v1441_v62 = vmax.f32 %v1423_v57, 0.0  ;;  %v2629_v59 = vpop.f32.mrb[22].mxu0  ;;  %v1645_v57 = vld [vmem:[%s3961_s14 + $0x48] sm:$0xff] }
 0x9db   :  { %v1446_v63 = vadd.f32 1e-07, %v1442_v11  ;;  %v1438_v1 = vadd.f32 %v2629_v59, %v3643_v28  ;;  %v1432_v60 = vpop.f32.mrb[23].mxu0  ;;  %v1647_v11 = vld [vmem:[%s3961_s14 + $0x58] sm:$0xff] }
 0x9dc   :  { %v1445_v3 = vadd.f32 1e-07, %v1441_v62  ;;  %v1433_v58 = vadd.f32 %v1432_v60, %v3641_v24  ;;  %v2827_v62 = vpack.c.bf16 %v1642_v54, %v1640_v53  ;;  %v2829_v59 = vpack.c.bf16 %v1647_v11, %v1645_v57  ;;  %v1649_v60 = vld [vmem:[%s3961_s14 + $0x68] sm:$0xff]  ;;  %v1765_v53 = vld [vmem:[#allocation16 + $0x20] sm:$0xff]  ;;  %v1784_v11 = vld [vmem:[#allocation16 + $0xb8] sm:$0xff] }
 0x9dd   :  { %v1444_v61 = vmax.f32 %v1438_v1, 0.0  ;;  %v1646_v1 = vld [vmem:[%s3961_s14 + $0x50] sm:$0xff]  ;;  %v1766_v54 = vld [vmem:[#allocation16 + $0x28] sm:$0xff] }
 0x9de   :  { %v1449_v5 = vmax.f32 %v1445_v3, %v1446_v63  ;;  %v1443_v6 = vmax.f32 %v1433_v58, 0.0  ;;  %v1783_v57 = vld [vmem:[#allocation16 + $0xb0] sm:$0xff] }
 0x9df   :  { %v1448_v30 = vadd.f32 1e-07, %v1444_v61  ;;  %v1648_v61 = vld [vmem:[%s3961_s14 + $0x60] sm:$0xff] }
 0x9e0   :  { %v1447_v7 = vadd.f32 1e-07, %v1443_v6 }
 0x9e2   :  { %v1450_v8 = vmax.f32 %v1447_v7, %v1448_v30 }
 0x9e4   :  { %v1451_v56 = vmax.f32 %v1449_v5, %v1450_v8  ;;  %v1650_v5 = vld [vmem:[%s3961_s14 + $0x70] sm:$0xff] }
 0x9e5   :  { %v2835_v6 = vpack.c.bf16 %v1650_v5, %v1648_v61  ;;  %v1769_v61 = vld [vmem:[#allocation16 + $0x40] sm:$0xff]  ;;  %v1770_v5 = vld [vmem:[#allocation16 + $0x48] sm:$0xff] }
 0x9e6   :  { %v1452_v9 = vrot.slane %v1451_v56, 4 }
 0x9e8   :  { %v1453_v10 = vmax.f32 %v1451_v56, %v1452_v9  ;;  %v1652_v56 = vld [vmem:[%s3961_s14 + $0x80] sm:$0xff]  ;;  %v1654_v9 = vld [vmem:[%s3961_s14 + $0x90] sm:$0xff] }
 0x9ea   :  { %v1454_v21 = vrot.slane %v1453_v10, 2 }
 0x9ec   :  { %v1455_v13 = vmax.f32 %v1453_v10, %v1454_v21  ;;  %v2839_v10 = vpack.c.bf16 %v1654_v9, %v1652_v56  ;;  %v1657_v21 = vld [vmem:[%s3961_s14 + $0xa8] sm:$0xff]  ;;  %v1772_v9 = vld [vmem:[#allocation16 + $0x58] sm:$0xff] }
 0x9ed   :  { %v1771_v56 = vld [vmem:[#allocation16 + $0x50] sm:$0xff] }
 0x9ee   :  { %v1456_v14 = vrot.slane %v1455_v13, 1 }
 0x9f0   :  { %v1457_v16 = vmax.f32 %v1455_v13, %v1456_v14  ;;  %v1659_v13 = vld [vmem:[%s3961_s14 + $0xb8] sm:$0xff] }
 0x9f1   :  { %v2841_v14 = vpack.c.bf16 %v1659_v13, %v1657_v21  ;;  %v1790_v21 = vld [vmem:[#allocation16 + $0xe8] sm:$0xff]  ;;  %v2875_v13 = vpack.c.bf16 %v1772_v9, %v1771_v56 }
 0x9f2   :  { %v1460_v17 = vsub.f32 %v1447_v7, %v1457_v16  ;;  %v1458_v18 = vsub.f32 %v1445_v3, %v1457_v16  ;;  %v1459_v28 = vsub.f32 %v1446_v63, %v1457_v16  ;;  %v1461_v19 = vsub.f32 %v1448_v30, %v1457_v16  ;;  %v1656_v16 = vld [vmem:[%s3961_s14 + $0xa0] sm:$0xff] }
 0x9f4   :  { %v1466_v20 = vmul.f32 1.442695, %v1460_v17  ;;  %v1462_v22 = vmul.f32 1.442695, %v1458_v18  ;;  %v1464_v24 = vmul.f32 1.442695, %v1459_v28 }
 0x9f5   :  { %v1468_v26 = vmul.f32 1.442695, %v1461_v19  ;;  %v1658_v17 = vld [vmem:[%s3961_s14 + $0xb0] sm:$0xff]  ;;  %v1661_v28 = vld [vmem:[%s3961_s14 + $0xc8] sm:$0xff]  ;;  %v1663_v19 = vld [vmem:[%s3961_s14 + $0xd8] sm:$0xff] }
 0x9f6   :  { %2994 = vpow2.f32 %v1466_v20  ;;  %v2843_v18 = vpack.c.bf16 %v1658_v17, %v1656_v16  ;;  %v2845_v20 = vpack.c.bf16 %v1663_v19, %v1661_v28 }
 0x9f7   :  { %2996 = vpow2.f32 %v1462_v22  ;;  %v1660_v22 = vld [vmem:[%s3961_s14 + $0xc0] sm:$0xff] }
 0x9f8   :  { %2998 = vpow2.f32 %v1464_v24  ;;  %v1662_v24 = vld [vmem:[%s3961_s14 + $0xd0] sm:$0xff] }
 0x9f9   :  { %3000 = vpow2.f32 %v1468_v26  ;;  %v2847_v26 = vpack.c.bf16 %v1662_v24, %v1660_v22 }
 0xa00   :  { %v2995_v32 = vpop.eup %2994 }
 0xa01   :  { %v2997_v33 = vpop.eup %2996  ;;  %v1547_v34 = vmul.f32 %v2995_v32, %v1447_v7  ;;  %v1655_v7 = vld [vmem:[%s3961_s14 + $0x98] sm:$0xff] }
 0xa02   :  { %v2999_v36 = vpop.eup %2998  ;;  %v1545_v29 = vmul.f32 %v2997_v33, %v1445_v3  ;;  %v1651_v3 = vld [vmem:[%s3961_s14 + $0x78] sm:$0xff] }
 0xa03   :  { %v3001_v37 = vpop.eup %3000  ;;  %v2805_v38 = vpack.c.bf16 %v2999_v36, %v2997_v33  ;;  %v1546_v39 = vmul.f32 %v2999_v36, %v1446_v63  ;;  %v1644_v63 = vld [vmem:[%s3961_s14 + $0x40] sm:$0xff]  ;;  %v2833_v58 = vpack.c.bf16 %v1651_v3, %v1649_v60  ;;  %v1667_v33 = vld [vmem:[%s3961_s14 + $0xf8] sm:$0xff] }
 0xa04   :  { %v2809_v40 = vpack.c.bf16 %v3001_v37, %v2995_v32  ;;  %v1548_v41 = vmul.f32 %v3001_v37, %v1448_v30  ;;  %v1653_v30 = vld [vmem:[%s3961_s14 + $0x88] sm:$0xff]  ;;  %v1664_v36 = vld [vmem:[%s3961_s14 + $0xe0] sm:$0xff] }
 0xa05   :  { %2806 = vmatprep.subr.bf16.mxu1 %v2805_v38  ;;  %v2813_v44 = vpack.c.bf16 %v1546_v39, %v1545_v29  ;;  %v2837_v8 = vpack.c.bf16 %v1655_v7, %v1653_v30  ;;  %v1665_v32 = vld [vmem:[%s3961_s14 + $0xe8] sm:$0xff]  ;;  %v1666_v29 = vld [vmem:[%s3961_s14 + $0xf0] sm:$0xff]  ;;  %v1785_v60 = vld [vmem:[#allocation16 + $0xc0] sm:$0xff]  ;;  %v2871_v7 = vpack.c.bf16 %v1770_v5, %v1769_v61 }
 0xa06   :  { %2808 = vmatpush3.bf16.msra.mxu1 %v2805_v38  ;;  %v2817_v45 = vpack.c.bf16 %v1548_v41, %v1547_v34  ;;  %v2849_v34 = vpack.c.bf16 %v1667_v33, %v1665_v32  ;;  %v2851_v37 = vpack.c.bf16 %v1666_v29, %v1664_v36  ;;  %v1777_v38 = vld [vmem:[#allocation16 + $0x80] sm:$0xff]  ;;  %v1778_v39 = vld [vmem:[#allocation16 + $0x88] sm:$0xff]  ;;  %v1788_v30 = vld [vmem:[#allocation16 + $0xd8] sm:$0xff] }
 0xa07   :  { %2810 = vmatprep.subr.bf16.mxu1 %v2809_v40  ;;  %2814 = vmatprep.subr.bf16.mxu0 %v2813_v44  ;;  %v2853_v41 = vpack.c.bf16 %v1778_v39, %v1777_v38  ;;  %v1786_v3 = vld [vmem:[#allocation16 + $0xc8] sm:$0xff] }
 0xa08   :  { %2816 = vmatpush3.bf16.msra.mxu0 %v2813_v44  ;;  %v1780_v44 = vld [vmem:[#allocation16 + $0x98] sm:$0xff]  ;;  %v1774_v38 = vld [vmem:[#allocation16 + $0x68] sm:$0xff] }
 0xa09   :  { %2818 = vmatprep.subr.bf16.mxu0 %v2817_v45 }
 0xa0a   :  { %2812 = vmatpush3.bf16.msra.mxu1 %v2809_v40  ;;  %v1761_v40 = vld [vmem:[#allocation16] sm:$0xff] }
 0xa0b   :  { %2822 = vmatprep.subr.bf16.mxu1 %v2821_v50  ;;  %v2857_v50 = vpack.c.bf16 %v1780_v44, %v1779_v43  ;;  %v1775_v43 = vld [vmem:[#allocation16 + $0x70] sm:$0xff]  ;;  %v1776_v44 = vld [vmem:[#allocation16 + $0x78] sm:$0xff] }
 0xa0c   :  { %2820 = vmatpush3.bf16.msra.mxu0 %v2817_v45  ;;  %v2855_v45 = vpack.c.bf16 %v1762_v42, %v1761_v40  ;;  %v1791_v40 = vld [vmem:[#allocation16 + $0xf0] sm:$0xff] }
 0xa0d   :  { %2639 = vmatmul.mubr.msk.f32.vlgmr.msra.gmra.mrb[16].mxu1 %vm625_vm4, %v3656_v25  ;;  %2854 = vmatprep.subr.bf16.mxu0 %v2853_v41  ;;  %v1792_v41 = vld [vmem:[#allocation16 + $0xf8] sm:$0xff] }
 0xa0e   :  { %2824 = vmatpush1.bf16.msra.mxu1 %v2823_v51  ;;  %1744 = vmatprep.mubr.f32.mxu1 %v3307_v0  ;;  %v2859_v51 = vpack.c.bf16 %v1764_v47, %v1763_v46  ;;  %v2881_v42 = vpack.c.bf16 %v1792_v41, %v1791_v40  ;;  %v2232_v40 = vld [vmem:[%s3965_s18 + $0x48] sm:$0xff] }
 0xa0f   :  { %2650 = vmatmul.mubr.msk.f32.vlgmr.msra.gmra.mrb[24].mxu0 %vm625_vm4, %v3656_v25  ;;  %2826 = vmatprep.subr.bf16.mxu1 %v2825_v52  ;;  %v2831_v25 = vpack.c.bf16 %v1646_v1, %v1644_v63  ;;  %v2861_v52 = vpack.c.bf16 %v1782_v55, %v1781_v12  ;;  %v1767_v63 = vld [vmem:[#allocation16 + $0x30] sm:$0xff]  ;;  %v1768_v1 = vld [vmem:[#allocation16 + $0x38] sm:$0xff]  ;;  %vm2322_vm4 = vcmask 25600  }
 0xa10   :  { %2856 = vmatpush3.bf16.msra.mxu0 %v2855_v45  ;;  %v2883_v45 = vpack.c.bf16 %v1776_v44, %v1775_v43  ;;  %v2234_v43 = vld [vmem:[%s3965_s18 + $0x58] sm:$0xff] }
 0xa11   :  { %2858 = vmatprep.subr.bf16.mxu0 %v2857_v50 }
 0xa12   :  { %2828 = vmatpush1.bf16.msra.mxu1 %v2827_v62  ;;  %v2863_v62 = vpack.c.bf16 %v1766_v54, %v1765_v53 }
 0xa13   :  { %2830 = vmatprep.subr.bf16.mxu1 %v2829_v59  ;;  %v2865_v59 = vpack.c.bf16 %v1784_v11, %v1783_v57 }
 0xa14   :  { %2860 = vmatpush3.bf16.msra.mxu0 %v2859_v51 }
 0xa15   :  { %2862 = vmatprep.subr.bf16.mxu0 %v2861_v52 }
 0xa16   :  { %2832 = vmatpush1.bf16.msra.mxu1 %v2831_v25  ;;  %v2867_v25 = vpack.c.bf16 %v1768_v1, %v1767_v63  ;;  %v2383_v1 = vld [vmem:[#allocation17] ss:$0 sm:$0xff] }
 0xa17   :  { %2834 = vmatprep.subr.bf16.mxu1 %v2833_v58  ;;  %v2869_v58 = vpack.c.bf16 %v1786_v3, %v1785_v60 }
 0xa18   :  { %2864 = vmatpush3.bf16.msra.mxu0 %v2863_v62 }
 0xa19   :  { %2866 = vmatprep.subr.bf16.mxu0 %v2865_v59 }
 0xa1a   :  { %2836 = vmatpush1.bf16.msra.mxu1 %v2835_v6  ;;  %v1787_v6 = vld [vmem:[#allocation16 + $0xd0] sm:$0xff] }
 0xa1b   :  { %2838 = vmatprep.subr.bf16.mxu1 %v2837_v8  ;;  %v2873_v8 = vpack.c.bf16 %v1788_v30, %v1787_v6 }
 0xa1c   :  { %2868 = vmatpush3.bf16.msra.mxu0 %v2867_v25 }
 0xa1d   :  { %2870 = vmatprep.subr.bf16.mxu0 %v2869_v58 }
 0xa1e   :  { %2840 = vmatpush1.bf16.msra.mxu1 %v2839_v10  ;;  %v1789_v10 = vld [vmem:[#allocation16 + $0xe0] sm:$0xff] }
 0xa1f   :  { %2842 = vmatprep.subr.bf16.mxu1 %v2841_v14  ;;  %v2877_v14 = vpack.c.bf16 %v1790_v21, %v1789_v10 }
 0xa20   :  { %2872 = vmatpush3.bf16.msra.mxu0 %v2871_v7 }
 0xa21   :  { %2874 = vmatprep.subr.bf16.mxu0 %v2873_v8 }
 0xa22   :  { %2844 = vmatpush1.bf16.msra.mxu1 %v2843_v18 }
 0xa23   :  { %2846 = vmatprep.subr.bf16.mxu1 %v2845_v20 }
 0xa24   :  { %2876 = vmatpush3.bf16.msra.mxu0 %v2875_v13 }
 0xa25   :  { %2878 = vmatprep.subr.bf16.mxu0 %v2877_v14 }
 0xa26   :  { %2848 = vmatpush1.bf16.msra.mxu1 %v2847_v26 }
 0xa27   :  { %2850 = vmatprep.subr.bf16.mxu1 %v2849_v34 }
 0xa2a   :  { %2852 = vmatpush1.bf16.msra.mxu1 %v2851_v37  ;;  %v1773_v37 = vld [vmem:[#allocation16 + $0x60] sm:$0xff] }
 0xa2b   :  { %2885 = vmatprep.subr.bf16.mxu1 %v3308_v2  ;;  %v2879_v39 = vpack.c.bf16 %v1774_v38, %v1773_v37  ;;  %v2230_v37 = vld [vmem:[%s3965_s18 + $0x38] sm:$0xff] }
 0xa2d   :  { %2880 = vmatpush3.bf16.msra.mxu0 %v2879_v39  ;;  %v2231_v39 = vld [vmem:[%s3965_s18 + $0x40] sm:$0xff] }
 0xa2e   :  { %2882 = vmatprep.subr.bf16.mxu0 %v2881_v42  ;;  %v2904_v41 = vpack.c.bf16 %v2232_v40, %v2231_v39  ;;  %v2233_v42 = vld [vmem:[%s3965_s18 + $0x50] sm:$0xff] }
 0xa2f   :  { %v2907_v44 = vpack.c.bf16 %v2234_v43, %v2233_v42 }
 0xa31   :  { %2884 = vmatpush3.bf16.msra.mxu0 %v2883_v45  ;;  %v2235_v45 = vld [vmem:[%s3965_s18 + $0x60] sm:$0xff] }
 0xae0   :  { %v2640_v16 = vpop.f32.mrb[16].mxu1 }
 0xae1   :  { %v1536_v17 = vpop.f32.mrb[17].mxu1  ;;  %vm1625_vm11 = vcmp.gt.f32.partialorder %v2640_v16, 0.0 }
 0xae2   :  { %v2651_v18 = vpop.f32.mrb[24].mxu0  ;;  %v1629_v28 = vsel %vm1625_vm11, %v2640_v16, 1.0  ;;  %vm1624_vm12 = vcmp.gt.f32.partialorder %v1536_v17, 0.0 }
 0xae3   :  { %v1627_v19 = vsel %vm1625_vm11, %v2651_v18, 0.0  ;;  %3002 = vrcp.f32 %v1629_v28  ;;  %v1615_v20 = vpop.f32.mrb[25].mxu0  ;;  %v1628_v22 = vsel %vm1624_vm12, %v1536_v17, 1.0  ;;  %v3310_v18 = vmov 0  }
 0xae4   :  { %v1626_v24 = vsel %vm1624_vm12, %v1615_v20, 0.0  ;;  %3004 = vrcp.f32 %v1628_v22  ;;  %2937 = vset.pattern.permute.xlu1 %v3310_v18  ;;  %v2186_v28 = vsel %vm2184_vm13, 1, %v3310_v18  ;;  %2936 = vset.pattern.permute.xlu0 %v3310_v18  ;;  %v3311_v20 = vmov 1  }
 0xae5   :  { %2191 = vperm.xlu1 %2937, %v2186_v28  }
 0xae9   :  { %2938 = vset.pattern.permute.xlu1 %v3311_v20 }
 0xaed   :  { %v3003_v26 = vpop.eup %3002 }
 0xaee   :  { %v3005_v32 = vpop.eup %3004  ;;  %v1633_v33 = vmul.f32 %v3003_v26, %v1627_v19  ;;  %v2185_v19 = vsel %vm2183_vm14, 1, %v3310_v18 }
 0xaef   :  { %v1632_v34 = vmul.f32 %v3005_v32, %v1626_v24  ;;  %2188 = vperm.xlu0 %2936, %v2185_v19   ;;  %2205 = vperm.xlu1 %2938, %v2185_v19   ;;  %v2224_v24 = vld [vmem:[%s3965_s18 + $0x8] sm:$0xff] }
 0xaf0   :  { %v1635_v29 = vadd.f32 %v1633_v33, %v3714_v48  ;;  %v2227_v33 = vld [vmem:[%s3965_s18 + $0x20] sm:$0xff] }
 0xaf1   :  { %v1634_v36 = vadd.f32 %v1632_v34, %v3716_v49  ;;  %v1668_v49 = vld [vmem:[#allocation14] sm:$0x3]  ;;  %v2228_v34 = vld [vmem:[%s3965_s18 + $0x28] sm:$0xff] }
 0xaf2   :  { %v1673_v50 = vrot.slane %v1668_v49, %v3606_v15  ;;  %v1677_v48 = vrot.slane %v1668_v49, %v3610_v27  ;;  %v2236_v49 = vld [vmem:[%s3965_s18 + $0x68] sm:$0xff] }
 0xaf3   :  { %1745 = vmatmul.mubr.f32.vlgmr.msra.gmra.mrb[18].mxu1 %v1634_v36  ;;  %2939 = vset.pattern.permute.xlu0 %v3311_v20  ;;  %v2898_v36 = vpack.c.bf16 %v2228_v34, %v2227_v33 }
 0xaf4   :  { %1750 = vmatprep.mubr.f32.mxu1 %v3307_v0  ;;  %2208 = vperm.xlu1 %2938, %v2186_v28  }
 0xaf7   :  { %1751 = vmatmul.mubr.f32.gmra.mrb[20].mxu1 %v1635_v29  ;;  %v2229_v29 = vld [vmem:[%s3965_s18 + $0x30] sm:$0xff] }
 0xaf8   :  { %2656 = vmatprep.mubr.msk.f32.mxu1 %vm3309_vm7, %v3307_v0  ;;  %v2901_v38 = vpack.c.bf16 %v2230_v37, %v2229_v29 }
 0xbc6   :  { %v1746_v46 = vpop.f32.mrb[18].mxu1 }
 0xbc7   :  { %v1747_v47 = vadd.f32 %v1746_v46, %v1673_v50  ;;  %v1748_v12 = vpop.f32.mrb[19].mxu1  ;;  %v2238_v46 = vld [vmem:[%s3965_s18 + $0x78] sm:$0xff] }
 0xbc8   :  { %v1749_v55 = vadd.f32 %v1748_v12, %v1677_v48 }
 0xbc9   :  { %v1757_v53 = vmax.f32 %v1747_v47, 0.0 }
 0xbca   :  { %v1758_v51 = vmax.f32 %v1749_v55, 0.0  ;;  %v1752_v52 = vpop.f32.mrb[20].mxu1  ;;  %v2192_v55 = vpop.permute.xlu1 %2191 }
 0xbcb   :  { %v1753_v54 = vadd.f32 %v1752_v52, %v1673_v50  ;;  %v1754_v57 = vpop.f32.mrb[21].mxu1  ;;  %v2910_v50 = vpack.c.bf16 %v2236_v49, %v2235_v45  ;;  %vm2194_vm0 = vcmp.eq.s32.totalorder %v2192_v55, 1 }
 0xbcc   :  { %v1755_v11 = vadd.f32 %v1754_v57, %v1677_v48  ;;  %1864 = vmatprep.mubr.f32.mxu0 %v1758_v51  ;;  %v2237_v48 = vld [vmem:[%s3965_s18 + $0x70] sm:$0xff]  ;;  %v2189_v57 = vpop.permute.xlu0 %2188 }
 0xbcd   :  { %1865 = vmatmul.mubr.f32.vlgmr.msra.gmra.mrb[26].mxu0 %v1757_v53  ;;  %v1759_v59 = vmax.f32 %v1753_v54, 0.0  ;;  %v2913_v47 = vpack.c.bf16 %v2238_v46, %v2237_v48  ;;  %vm2193_vm15 = vcmp.eq.s32.totalorder %v2189_v57, 1 }
 0xbce   :  { %v1760_v62 = vmax.f32 %v1755_v11, 0.0  ;;  %v2206_v54 = vpop.permute.xlu1 %2205 }
 0xbcf   :  { %vm2210_vm2 = vcmp.eq.s32.totalorder %v2206_v54, 1 }
 0xbd0   :  { %1869 = vmatprep.mubr.f32.mxu0 %v1760_v62 }
 0xbd1   :  { %1870 = vmatmul.mubr.f32.gmra.mrb[28].mxu0 %v1759_v59 }
 0xbd2   :  { %2661 = vmatprep.mubr.msk.f32.mxu0 %vm1113_vm9, %v3687_v23 }
 0xca0   :  { %v2529_v15 = vpop.f32.mrb[26].mxu0 }
 0xca1   :  { %v2530_v27 = vpop.f32.mrb[27].mxu0 }
 0xca2   :  { %v2531_v63 = vadd.f32 %v2530_v27, %v2529_v15 }
 0xca4   :  { %v2532_v60 = vpop.f32.mrb[28].mxu0  ;;  %v1867_v25 = vadd.f32 %v2531_v63, %v2383_v1 }
 0xca5   :  { %v2533_v3 = vpop.f32.mrb[29].mxu0 }
 0xca6   :  { %v2534_v58 = vadd.f32 %v2533_v3, %v2532_v60  ;;  %v1875_v5 = vmax.f32 %v1867_v25, 0.0 }
 0xca8   :  { %v1872_v61 = vadd.f32 %v2534_v58, %v2383_v1 }
 0xcaa   :  { %v1876_v6 = vmax.f32 %v1872_v61, 0.0 }
 0xcac   :  { %v2886_v30 = vpack.c.bf16 %v1876_v6, %v1875_v5 }
 0xcae   :  { %2887 = vmatpush3.bf16.msra.mxu1 %v2886_v30 }
 0xcaf   :  { %2888 = vmatprep.subr.bf16.mxu1 %v3308_v2 }
 0xcb1   :  { %2657 = vmatmul.mubr.msk.f32.vlgmr.msra.gmra.mrb[22].mxu1 %vm498_vm3, %v3676_v4 }
 0xcb2   :  { %2668 = vmatprep.mubr.msk.f32.mxu1 %vm3309_vm7, %v3307_v0 }
 0xd84   :  { %v1943_v7 = vpop.f32.mrb[22].mxu1 }
 0xd85   :  { %v1947_v8 = vmul.f32 %v3691_v31, %v1943_v7  ;;  %v2658_v56 = vpop.f32.mrb[23].mxu1 }
 0xd87   :  { %2659 = vmatprep.subr.msk.mxu0 %vm1120_vm10, %v1947_v8 }
 0xd88   :  { %2660 = vmatpush3.msk.msra.mxu0 %vm1120_vm10, %v1947_v8 }
 0xd89   :  { %2662 = vmatmul.mubr.msk.f32.vlgmr.msra.gmra.mrb[30].mxu0 %vm1113_vm9, %v3694_v35 }
 0xd8a   :  { %2673 = vmatprep.mubr.msk.f32.mxu0 %vm1113_vm9, %v3687_v23  ;;  %v2223_v23 = vld [vmem:[%s3965_s18] sm:$0xff] }
 0xd8b   :  { %v2892_v26 = vpack.c.bf16 %v2224_v24, %v2223_v23 }
 0xe5c   :  { %v2663_v9 = vpop.f32.mrb[30].mxu0 }
 0xe5d   :  { %v3858_v10 = vsub.f32 %v1876_v6, %v2663_v9  ;;  %v2017_v21 = vpop.f32.mrb[31].mxu0 }
 0xe5e   :  { %v3860_v13 = vsub.f32 %v1875_v5, %v2017_v21 }
 0xe5f   :  { %v2029_v14 = vmul.f32 %v3858_v10, %v3858_v10 }
 0xe60   :  { %v2028_v16 = vmul.f32 %v3860_v13, %v3860_v13 }
 0xe62   :  { %v2889_v17 = vpack.c.bf16 %v2029_v14, %v2028_v16  ;;  %v2392_v16 = vld [vmem:[#allocation19] ss:$0 sm:$0xff] }
 0xe64   :  { %2890 = vmatpush3.bf16.msra.mxu1 %v2889_v17 }
 0xe65   :  { %2891 = vmatprep.subr.bf16.mxu1 %v3308_v2 }
 0xe67   :  { %2669 = vmatmul.mubr.msk.f32.vlgmr.msra.gmra.mrb[24].mxu1 %vm498_vm3, %v3676_v4  ;;  %vm2221_vm3 = vcmask 1040384  }
 0xe68   :  { %2708 = vmatprep.mubr.msk.f32.mxu1 %vm3309_vm7, %v3307_v0  ;;  %2893 = vmatpush3.bf16.msra.mxu1 %v2892_v26 }
 0xe69   :  { %2894 = vmatprep.subr.bf16.mxu1 %v3308_v2 }
 0xf3a   :  { %v2096_v4 = vpop.f32.mrb[24].mxu1 }
 0xf3b   :  { %v2100_v22 = vmul.f32 %v3691_v31, %v2096_v4  ;;  %v2670_v0 = vpop.f32.mrb[25].mxu1  ;;  %v2225_v31 = vld [vmem:[%s3965_s18 + $0x10] sm:$0xff] }
 0xf3d   :  { %2671 = vmatprep.subr.msk.mxu0 %vm1120_vm10, %v2100_v22 }
 0xf3e   :  { %2672 = vmatpush3.msk.msra.mxu0 %vm1120_vm10, %v2100_v22 }
 0xf3f   :  { %2674 = vmatmul.mubr.msk.f32.vlgmr.msra.gmra.mrb[32].mxu0 %vm1113_vm9, %v3694_v35  ;;  %v2226_v35 = vld [vmem:[%s3965_s18 + $0x18] sm:$0xff]  ;;  %s3312_s18 = smov [#allocation20]  }
 0xf40   :  { %v2895_v32 = vpack.c.bf16 %v2226_v35, %v2225_v31  ;;  %s2330_s17 = sshll.u32 %s3312_s18, 4  ;;  %s2331_s17 = int_to_ptr.vmem [resolvable:$true] %s2330_s17 }
 0xf41   :  { %s3256_s25 = scalar_lea.vmem %s2331_s17, 32  ;;  %p3261_p5 = scmp.lt.s32.totalorder %s2331_s17, %s2331_s17 }
 0xf42   :  { %2896 = vmatpush3.bf16.msra.mxu1 %v2895_v32  ;;  %p3257_p4 = scmp.ne.s32.totalorder %s2331_s17, %s3256_s25  ;;  %p3262_p6 = scmp.lt.s32.totalorder %s3256_s25, %s3256_s25 }
 0xf43   :  { %2897 = vmatprep.subr.bf16.mxu1 %v3308_v2 }
 0xf44   :  { %p3263_p7 = por %p3262_p6, %p3261_p5 }
 0xf46   :  { %2899 = vmatpush3.bf16.msra.mxu1 %v2898_v36  ;;  %p3264_p8 = pnand %p3263_p7, %p3257_p4 }
 0xf47   :  { %2900 = vmatprep.subr.bf16.mxu1 %v3308_v2 }
 0xf4a   :  { %2902 = vmatpush3.bf16.msra.mxu1 %v2901_v38 }
 0xf4b   :  { %2903 = vmatprep.subr.bf16.mxu1 %v3308_v2 }
 0xf4e   :  { %2905 = vmatpush3.bf16.msra.mxu1 %v2904_v41 }
 0xf4f   :  { %2906 = vmatprep.subr.bf16.mxu1 %v3308_v2 }
 0xf52   :  { %2908 = vmatpush3.bf16.msra.mxu1 %v2907_v44 }
 0xf53   :  { %2909 = vmatprep.subr.bf16.mxu1 %v3308_v2 }
 0xf56   :  { %2911 = vmatpush3.bf16.msra.mxu1 %v2910_v50 }
 0xf57   :  { %2912 = vmatprep.subr.bf16.mxu1 %v3308_v2  ;;  %v2209_v2 = vpop.permute.xlu1 %2208 }
 0xf58   :  { %vm2211_vm1 = vcmp.eq.s32.totalorder %v2209_v2, 1 }
 0xf5a   :  { %2914 = vmatpush3.bf16.msra.mxu1 %v2913_v47 }
0x1012   :  { %v2675_v12 = vpop.f32.mrb[32].mxu0 }
0x1013   :  { %v2176_v51 = vadd.f32 1e-05, %v2675_v12  ;;  %v2170_v52 = vpop.f32.mrb[33].mxu0 }
0x1014   :  { %v2171_v53 = vadd.f32 1e-05, %v2170_v52 }
0x1015   :  { %3006 = vrsqrt.f32 %v2176_v51 }
0x1016   :  { %3008 = vrsqrt.f32 %v2171_v53 }
0x101f   :  { %v3007_v11 = vpop.eup %3006 }
0x1020   :  { %v3009_v62 = vpop.eup %3008  ;;  %v2182_v59 = vmul.f32 %v3007_v11, %v3858_v10 }
0x1021   :  { %v2181_v15 = vmul.f32 %v3009_v62, %v3860_v13 }
0x1022   :  { %v2196_v27 = vsel %vm2194_vm0, %v2182_v59, -1e+30  ;;  %v2213_v63 = vsel %vm2211_vm1, %v2182_v59, -1e+30 }
0x1023   :  { %v2212_v1 = vsel %vm2210_vm2, %v2181_v15, -1e+30  ;;  %v2195_v60 = vsel %vm2193_vm15, %v2181_v15, -1e+30 }
0x1024   :  { %v2214_v3 = vmax.f32 %v2212_v1, %v2213_v63  ;;  %v2197_v25 = vmax.f32 %v2195_v60, %v2196_v27 }
0x1026   :  { %v2215_v58 = vrot.slane %v2214_v3, 4  ;;  %v2198_v61 = vrot.slane %v2197_v25, 4 }
0x1028   :  { %v2216_v5 = vmax.f32 %v2214_v3, %v2215_v58  ;;  %v2199_v6 = vmax.f32 %v2197_v25, %v2198_v61 }
0x102a   :  { %v2217_v30 = vrot.slane %v2216_v5, 2  ;;  %v2200_v7 = vrot.slane %v2199_v6, 2 }
0x102c   :  { %v2218_v8 = vmax.f32 %v2216_v5, %v2217_v30  ;;  %v2201_v56 = vmax.f32 %v2199_v6, %v2200_v7 }
0x102e   :  { %v2219_v9 = vrot.slane %v2218_v8, 1  ;;  %v2202_v10 = vrot.slane %v2201_v56, 1 }
0x1030   :  { %v2220_v21 = vmax.f32 %v2218_v8, %v2219_v9  ;;  %v2203_v13 = vmax.f32 %v2201_v56, %v2202_v10 }
0x1032   :  { %v2222_v14 = vsel %vm2221_vm3, %v2203_v13, %v2220_v21 }
0x1033   :  { %2709 = vmatmul.mubr.f32.vlgmr.msra.gmra.mrb[26].mxu1 %v2222_v14 }
0x1106   :  { %v2312_v17 = vpop.f32.mrb[26].mxu1 }
0x1107   :  { %v2313_v18 = vadd.f32 %v2392_v16, %v2312_v17  ;;  %v2710_v28 = vpop.f32.mrb[27].mxu1 }
0x1109   :  { %v2393_v19 = vmul.f32 -1.442695, %v2313_v18 }
0x110b   :  { %3010 = vpow2.f32 %v2393_v19 }
0x1115   :  { %v3011_v20 = vpop.eup %3010 }
0x1116   :  { %v2319_v4 = vadd.f32 1.0, %v3011_v20 }
0x1118   :  { %3012 = vrcp.f32 %v2319_v4 }
0x1122   :  { %v3013_v22 = vpop.eup %3012 }
0x1123   :  { %2323 = vst.msk [vmem:[#allocation20] sm:$0x3] %vm2322_vm4, %v3013_v22 }
0x1124   :  { %3267 = shalt.err (!%p3264_p8)
}
0x1125   :  { %s3268_s28 = scalar_lea.hbm %s3967_s20, 32 }
0x1126   :  { %p3269_p9 = scmp.ne.s32.totalorder %s3967_s20, %s3268_s28  ;;  %p3272_p10 = scmp.lt.u32.totalorder %s3268_s28, %s3967_s20 }
0x1128   :  { %p3274_p11 = pnand %p3272_p10, %p3269_p9 }
0x112a   :  { %3277 = shalt.err (!%p3274_p11)
}
0x112b   :  { %2333 = dma.vmem_to_hbm [thread:$0]  %s2331_s17, 32, %s3967_s20, [#allocation4]  }
0x112c   :  { %3290 = dma.done.wait [#allocation4], 32  }
0x112d   :  { %3291 = vsyncadd [#allocation4], 4294967264 }
0x112e   :  { %2337 = vsyncpa [#allocation3], 1 }
0x112f   :  { %2338 = vsyncpa [#allocation6], 1 }
0x1130   :  { %2339 = vsyncpa [#allocation9], 1 }
0x1131   :  { %2340 = vsyncpa [#allocation12], 1 }
0x1132   :  { %2341 = vsyncpa [#allocation15], 1 }
0x1133   :  { %2342 = vsyncpa [#allocation18], 1 }
0x1134   :  { %2343 = vsyncpa [#allocation4], 1 }

</bundles_post_ra>
